<compile_context>
chip_gen: v6e
topology: v6e:2x2x1
jax: 0.10.0
libtpu: 0.0.40
codegen_flags: <defaults>
</compile_context>

<pallas_src>
import functools

import jax
import jax.numpy as jnp
from jax.experimental import pallas as pl
from jax.experimental.pallas import tpu as pltpu  # noqa: F401  (kept for pltpu.roll variant)


# ------------------------------- fused kernel --------------------------------------
def _fused_forward_kernel(*refs, n_conv, n_lstm, conv_meta, hidden):
    # refs: x | (conv_w2, conv_b)*n_conv
    #         | (w_ih0, w_hh0, bias0) | (w_xh, bias)*(n_lstm-1)
    #         | fc1_w, fc1_b, fc2_w, fc2_b | out
    it = iter(refs)
    x_ref = next(it)
    conv_refs = [(next(it), next(it)) for _ in range(n_conv)]
    lstm0 = (next(it), next(it), next(it))
    lstm_hi = [(next(it), next(it)) for _ in range(n_lstm - 1)]
    w1_ref, b1_ref, w2_ref, b2_ref = next(it), next(it), next(it), next(it)
    o_ref = next(it)

    f32 = jnp.float32
    B = x_ref.shape[0]
    H = hidden

    # =========== conv stack: relu(conv1d) + max_pool1d(2), one matmul each ===========
    L = x_ref.shape[2]
    feat = jnp.concatenate([x_ref[b].astype(f32) for b in range(B)], axis=1)  # (C, B*L)
    for li in range(n_conv):
        w_ref, bias_ref = conv_refs[li]
        K, pad = conv_meta[li]
        C_in = feat.shape[0]
        C_out = w_ref.shape[0]
        L_in = L
        L_out = L_in + 2 * pad - K + 1
        L_pool = L_out // 2

        # im2col RHS: rows = (tap k, in-channel c), cols = (batch b, position l).
        # Padding + tap shifts are pure value slices/concats (vregs only, no VMEM).
        zpad = jnp.zeros((C_in, pad), f32) if pad else None
        im2col = []
        for b in range(B):
            xb = feat[:, b * L_in:(b + 1) * L_in]
            if pad:
                xb = jnp.concatenate([zpad, xb, zpad], axis=1)          # (C_in, L_in+2p)
            im2col.append(jnp.concatenate([xb[:, k:k + L_out] for k in range(K)],
                                          axis=0))                      # (K*C_in, L_out)
        rhs = jnp.concatenate(im2col, axis=1)                           # (K*C_in, B*L_out)

        conv = jnp.dot(w_ref[...], rhs, preferred_element_type=f32) + bias_ref[...]
        conv = jnp.maximum(conv, 0.0)                                   # (C_out, B*L_out)

        # stride-2 max pool: shift-left-by-one + elementwise max (VPU/XLU), then
        # one even-column selection matmul.  pooled[:, b*Lp+p] = max(col 2p, col 2p+1).
        shifted = jnp.concatenate([conv[:, 1:], jnp.zeros((C_out, 1), f32)], axis=1)
        m = jnp.maximum(conv, shifted)
        r_idx = jax.lax.broadcasted_iota(jnp.int32, (B * L_out, B * L_pool), 0)
        c_idx = jax.lax.broadcasted_iota(jnp.int32, (B * L_out, B * L_pool), 1)
        if L_out == 2 * L_pool:                                         # even L_out
            sel = (r_idx == 2 * c_idx).astype(f32)
        else:                                                           # odd L_out (truncated)
            sel = (r_idx == 2 * (c_idx % L_pool)
                   + (c_idx // L_pool) * L_out).astype(f32)
        feat = jnp.dot(m, sel, preferred_element_type=f32)              # (C_out, B*L_pool)
        L = L_pool

    # ====== torch x.view(B, -1, C): t-major (T*B, D_in) LSTM input, vreg-only ======
    # feat[c, b*T + l] = conv_out[b, c, l]; timestep t of sample b is the slice
    # [t*C, (t+1)*C) of conv_out[b]'s row-major flatten.
    C_last = feat.shape[0]
    T = L
    D_in = C_last

    def seq_row(t, b):
        segs, i, end = [], t * D_in, (t + 1) * D_in
        while i < end:
            c_ch, p = i // T, i % T
            n = min(T - p, end - i)
            segs.append(feat[c_ch:c_ch + 1, b * T + p:b * T + p + n])
            i += n
        return segs[0] if len(segs) == 1 else jnp.concatenate(segs, axis=1)

    seq_tb = jnp.concatenate([seq_row(t, b) for t in range(T) for b in range(B)],
                             axis=0)                                    # (T*B, D_in)

    # =================== multi-layer LSTM, wavefront-pipelined =====================
    w_ih0_ref, w_hh0_ref, b0_ref = lstm0
    # Hoisted layer-0 input projection for ALL timesteps (dense, no kron):
    proj0 = jnp.dot(seq_tb, w_ih0_ref[...], preferred_element_type=f32) + b0_ref[...]
    whh0 = w_hh0_ref[...]                                               # (H, 4H)
    w_hi = [(w[...], bb[...]) for (w, bb) in lstm_hi]                   # [(2H,4H),(1,4H)]

    h = [jnp.zeros((B, H), f32) for _ in range(n_lstm)]
    c = [jnp.zeros((B, H), f32) for _ in range(n_lstm)]
    x_in = [[None] * T for _ in range(n_lstm)]   # inputs for layers >= 1 (prev layer h_t)
    out_h = [None] * T                           # last layer's per-step hidden states

    # Gate order is [i, f, o | g]: one sigmoid on a (B,3H) slab, one tanh on (B,H).
    def lstm_cell(gates, li):
        ifo = jax.nn.sigmoid(gates[:, :3 * H])
        g = jnp.tanh(gates[:, 3 * H:])
        c[li] = ifo[:, H:2 * H] * c[li] + ifo[:, :H] * g
        h[li] = ifo[:, 2 * H:3 * H] * jnp.tanh(c[li])
        return h[li]

    # Diagonal s runs (layer li, timestep t = s - li); pieces within one diagonal are
    # data-independent, so adjacent layers' MXU / EUP work can co-issue.
    for s in range(T + n_lstm - 1):
        for li in range(n_lstm):
            t = s - li
            if t < 0 or t >= T:
                continue
            if li == 0:
                gates = proj0[t * B:(t + 1) * B, :] + jnp.dot(
                    h[0], whh0, preferred_element_type=f32)
            else:
                w_xh, bias = w_hi[li - 1]
                gates = jnp.dot(jnp.concatenate([x_in[li][t], h[li]], axis=1),
                                w_xh, preferred_element_type=f32) + bias
            h_t = lstm_cell(gates, li)
            if li + 1 < n_lstm:
                x_in[li + 1][t] = h_t
            else:
                out_h[t] = h_t

    # ============ MLP head: relu(fc1) -> fc2 (torch reshape(B, -1) for free) ============
    seq_out = jnp.concatenate(out_h, axis=1)                            # (B, T*H)
    hid = jnp.maximum(
        jnp.dot(seq_out, w1_ref[...], preferred_element_type=f32) + b1_ref[...], 0.0)
    out = jnp.dot(hid, w2_ref[...], preferred_element_type=f32) + b2_ref[...]
    o_ref[...] = out.astype(o_ref.dtype)


# -------------------------- one-time parameter packing -----------------------------
def pack_params(params, conv_cfg):
    """Transform PyTorch-layout weights into the fused kernel's layout (do once)."""
    f32 = jnp.float32

    def gate_perm(m):  # torch gate order (i, f, g, o) -> kernel order (i, f, o, g)
        gi, gf, gg, go = jnp.split(m, 4, axis=-1)
        return jnp.concatenate([gi, gf, go, gg], axis=-1)

    packed = []
    for (w, b) in params["conv"]:
        c_out, c_in, k = w.shape
        # (C_out, K*C_in); column k*C_in + c == w[o, c, k] — matches the kernel's
        # im2col row ordering (tap-major, then in-channel).
        packed.append(jnp.transpose(w, (0, 2, 1)).reshape(c_out, k * c_in).astype(f32))
        packed.append(b.reshape(-1, 1).astype(f32))
    for li, (w_ih, w_hh, b_ih, b_hh) in enumerate(params["lstm"]):
        wih_p = gate_perm(w_ih.T.astype(f32))                    # (D_in, 4H)
        whh_p = gate_perm(w_hh.T.astype(f32))                    # (H, 4H)
        bias_p = gate_perm((b_ih + b_hh).reshape(1, -1).astype(f32))
        if li == 0:
            packed += [wih_p, whh_p, bias_p]                     # hoisted dense projection
        else:
            packed += [jnp.concatenate([wih_p, whh_p], axis=0),  # (2H, 4H) fused [x,h] weight
                       bias_p]
    packed.append(params["fc1_w"].T.astype(f32))
    packed.append(params["fc1_b"].reshape(1, -1).astype(f32))
    packed.append(params["fc2_w"].T.astype(f32))
    packed.append(params["fc2_b"].reshape(1, -1).astype(f32))
    return packed


# ------------------------------- fused forward pass --------------------------------
def flexible_lstm_forward(x, packed, *, conv_cfg, num_channels, hidden, n_lstm, out_size):
    B = x.shape[0]
    x = x.reshape(B, num_channels, -1)        # mirrors torch x.view(B, 23, -1) (no-op here)
    kernel = functools.partial(
        _fused_forward_kernel, n_conv=len(conv_cfg), n_lstm=n_lstm,
        conv_meta=tuple((k, p) for _, k, p in conv_cfg), hidden=hidden)
    return pl.pallas_call(
        kernel,
        out_shape=jax.ShapeDtypeStruct((B, out_size), x.dtype),
    )(x, *packed)


# ------------------------------- Parameter init ------------------------------------
def init_params(key, conv_cfg, num_channels, hidden, n_lstm, out_size, data_len):
    def uni(k, shape, scale=0.1):
        return jax.random.uniform(k, shape, jnp.float32, -scale, scale)

    keys = iter(jax.random.split(key, 2 * len(conv_cfg) + 4 * n_lstm + 4))
    params = {"conv": [], "lstm": []}
    in_ch, L = num_channels, data_len
    for out_ch, ksz, pad in conv_cfg:
        params["conv"].append((uni(next(keys), (out_ch, in_ch, ksz)),
                               uni(next(keys), (out_ch,))))
        in_ch = out_ch
        # exact conv+pool arithmetic (== data_len//2 only when k == 2*pad + 1, which
        # the torch module implicitly requires for its fc1 sizing to be consistent)
        L = (L + 2 * pad - ksz + 1) // 2
    d_in = in_ch
    for _ in range(n_lstm):
        params["lstm"].append((uni(next(keys), (4 * hidden, d_in)),
                               uni(next(keys), (4 * hidden, hidden)),
                               uni(next(keys), (4 * hidden,)),
                               uni(next(keys), (4 * hidden,))))
        d_in = hidden
    params["fc1_w"] = uni(next(keys), (128, hidden * L))
    params["fc1_b"] = uni(next(keys), (128,))
    params["fc2_w"] = uni(next(keys), (out_size, 128))
    params["fc2_b"] = uni(next(keys), (out_size,))
    return params


# ----------------------- plain-JAX reference (validation only) ---------------------
def reference_forward(x, params, conv_cfg):
    B = x.shape[0]
    x = x.reshape(B, 23, -1)
    for (w, b), (_, k, pad) in zip(params["conv"], conv_cfg):
        xp = jnp.pad(x, ((0, 0), (0, 0), (pad, pad)))
        L_out = xp.shape[2] - k + 1
        out = jnp.zeros((B, w.shape[0], L_out), jnp.float32) + b[None, :, None]
        for kk in range(k):
            out = out + jnp.einsum("oc,bcl->bol", w[:, :, kk], xp[:, :, kk:kk + L_out])
        out = jax.nn.relu(out)
        L_pool = L_out // 2
        x = out[:, :, :2 * L_pool].reshape(B, w.shape[0], L_pool, 2).max(axis=-1)
    C = x.shape[1]
    x = x.reshape(B, -1, C)
    H = params["lstm"][0][1].shape[1]
    seq = x
    for (w_ih, w_hh, b_ih, b_hh) in params["lstm"]:
        T = seq.shape[1]
        h = jnp.zeros((B, H), jnp.float32)
        c = jnp.zeros((B, H), jnp.float32)
        outs = []
        for t in range(T):
            gates = seq[:, t, :] @ w_ih.T + h @ w_hh.T + b_ih + b_hh
            i_g = jax.nn.sigmoid(gates[:, 0 * H:1 * H])
            f_g = jax.nn.sigmoid(gates[:, 1 * H:2 * H])
            g_g = jnp.tanh(gates[:, 2 * H:3 * H])
            o_g = jax.nn.sigmoid(gates[:, 3 * H:4 * H])
            c = f_g * c + i_g * g_g
            h = o_g * jnp.tanh(c)
            outs.append(h)
        seq = jnp.stack(outs, axis=1)
    flat = seq.reshape(B, -1)
    hid = jax.nn.relu(flat @ params["fc1_w"].T + params["fc1_b"])
    return hid @ params["fc2_w"].T + params["fc2_b"]


if __name__ == "__main__":
    # Module config: 23 input channels (hard-coded by the PyTorch forward's view),
    # two conv layers, data_len=16 -> LSTM seq_len 4, hidden=32, 2 LSTM layers.
    B, NUM_CH, DATA_LEN = 2, 23, 16
    CONV_CFG = ((8, 3, 1), (16, 3, 1))
    HIDDEN, N_LSTM, OUT_SIZE = 32, 2, 5

    key = jax.random.PRNGKey(0)
    k_params, k_x = jax.random.split(key)
    params = init_params(k_params, CONV_CFG, NUM_CH, HIDDEN, N_LSTM, OUT_SIZE, DATA_LEN)
    x = jax.random.normal(k_x, (B, NUM_CH, DATA_LEN), jnp.float32)

    # One-time weight packing; the hot path is a single grid-less pallas_call.
    packed = pack_params(params, CONV_CFG)

    fwd = jax.jit(functools.partial(
        flexible_lstm_forward, conv_cfg=CONV_CFG, num_channels=NUM_CH,
        hidden=HIDDEN, n_lstm=N_LSTM, out_size=OUT_SIZE))
    y = fwd(x, packed)
    jax.block_until_ready(y)
    assert y.shape == (B, OUT_SIZE), y.shape

    # numerical check against a plain-JAX mirror of the PyTorch forward
    with jax.default_matmul_precision("highest"):
        y_ref = reference_forward(x, params, CONV_CFG)
    assert jnp.allclose(y, y_ref, rtol=5e-3, atol=5e-3), (y, y_ref)
    print("KERNEL_OK")
</pallas_src>

<mosaic_0001>
module attributes {stable_mosaic.version = 11 : i64} {
  func.func @_fused_forward_kernel(%arg0: memref<2x23x16xf32, #tpu.memory_space<vmem>>, %arg1: memref<8x69xf32, #tpu.memory_space<vmem>>, %arg2: memref<8x1xf32, #tpu.memory_space<vmem>>, %arg3: memref<16x24xf32, #tpu.memory_space<vmem>>, %arg4: memref<16x1xf32, #tpu.memory_space<vmem>>, %arg5: memref<16x128xf32, #tpu.memory_space<vmem>>, %arg6: memref<32x128xf32, #tpu.memory_space<vmem>>, %arg7: memref<1x128xf32, #tpu.memory_space<vmem>>, %arg8: memref<64x128xf32, #tpu.memory_space<vmem>>, %arg9: memref<1x128xf32, #tpu.memory_space<vmem>>, %arg10: memref<128x128xf32, #tpu.memory_space<vmem>>, %arg11: memref<1x128xf32, #tpu.memory_space<vmem>>, %arg12: memref<128x5xf32, #tpu.memory_space<vmem>>, %arg13: memref<1x5xf32, #tpu.memory_space<vmem>>, %arg14: memref<2x5xf32, #tpu.memory_space<vmem>>) attributes {dimension_semantics = [], scalar_prefetch = 0 : i64, scratch_operands = 0 : i64, tpu.core_type = #tpu.core_type<tc>} {
    %c0 = arith.constant 0 : index
    %c0_0 = arith.constant 0 : index
    %c0_1 = arith.constant 0 : index
    %0 = vector.load %arg0[%c0, %c0_0, %c0_1] : memref<2x23x16xf32, #tpu.memory_space<vmem>>, vector<1x23x16xf32>
    %1 = vector.shape_cast %0 : vector<1x23x16xf32> to vector<23x16xf32>
    %c1 = arith.constant 1 : index
    %c0_2 = arith.constant 0 : index
    %c0_3 = arith.constant 0 : index
    %2 = vector.load %arg0[%c1, %c0_2, %c0_3] : memref<2x23x16xf32, #tpu.memory_space<vmem>>, vector<1x23x16xf32>
    %3 = vector.shape_cast %2 : vector<1x23x16xf32> to vector<23x16xf32>
    %4 = tpu.concatenate %1, %3 in 1 : vector<23x16xf32>, vector<23x16xf32> -> vector<23x32xf32>
    %cst = arith.constant 0.000000e+00 : f32
    %5 = vector.broadcast %cst : f32 to vector<23x1xf32>
    %6 = vector.extract_strided_slice %4 {offsets = [0, 0], sizes = [23, 16], strides = [1, 1]} : vector<23x32xf32> to vector<23x16xf32>
    %7 = tpu.concatenate %5, %6, %5 in 1 : vector<23x1xf32>, vector<23x16xf32>, vector<23x1xf32> -> vector<23x18xf32>
    %8 = vector.extract_strided_slice %7 {offsets = [0, 0], sizes = [23, 16], strides = [1, 1]} : vector<23x18xf32> to vector<23x16xf32>
    %9 = vector.extract_strided_slice %7 {offsets = [0, 1], sizes = [23, 16], strides = [1, 1]} : vector<23x18xf32> to vector<23x16xf32>
    %10 = vector.extract_strided_slice %7 {offsets = [0, 2], sizes = [23, 16], strides = [1, 1]} : vector<23x18xf32> to vector<23x16xf32>
    %11 = tpu.concatenate %8, %9, %10 in 0 : vector<23x16xf32>, vector<23x16xf32>, vector<23x16xf32> -> vector<69x16xf32>
    %12 = vector.extract_strided_slice %4 {offsets = [0, 16], sizes = [23, 16], strides = [1, 1]} : vector<23x32xf32> to vector<23x16xf32>
    %13 = tpu.concatenate %5, %12, %5 in 1 : vector<23x1xf32>, vector<23x16xf32>, vector<23x1xf32> -> vector<23x18xf32>
    %14 = vector.extract_strided_slice %13 {offsets = [0, 0], sizes = [23, 16], strides = [1, 1]} : vector<23x18xf32> to vector<23x16xf32>
    %15 = vector.extract_strided_slice %13 {offsets = [0, 1], sizes = [23, 16], strides = [1, 1]} : vector<23x18xf32> to vector<23x16xf32>
    %16 = vector.extract_strided_slice %13 {offsets = [0, 2], sizes = [23, 16], strides = [1, 1]} : vector<23x18xf32> to vector<23x16xf32>
    %17 = tpu.concatenate %14, %15, %16 in 0 : vector<23x16xf32>, vector<23x16xf32>, vector<23x16xf32> -> vector<69x16xf32>
    %18 = tpu.concatenate %11, %17 in 1 : vector<69x16xf32>, vector<69x16xf32> -> vector<69x32xf32>
    %c0_4 = arith.constant 0 : index
    %c0_5 = arith.constant 0 : index
    %19 = vector.load %arg1[%c0_4, %c0_5] : memref<8x69xf32, #tpu.memory_space<vmem>>, vector<8x69xf32>
    %cst_6 = arith.constant dense<0.000000e+00> : vector<8x32xf32>
    %20 = tpu.matmul %19, %18, %cst_6 {dimension_numbers = #tpu.dot_dimension_numbers<[1], [0], [0], [1], [0, 0, 1, 1], [], []>} : vector<8x69xf32>, vector<69x32xf32>, vector<8x32xf32> -> vector<8x32xf32>
    %c0_7 = arith.constant 0 : index
    %c0_8 = arith.constant 0 : index
    %21 = vector.load %arg2[%c0_7, %c0_8] : memref<8x1xf32, #tpu.memory_space<vmem>>, vector<8x1xf32>
    %22 = vector.broadcast %21 : vector<8x1xf32> to vector<8x32xf32>
    %23 = arith.addf %20, %22 : vector<8x32xf32>
    %cst_9 = arith.constant 0.000000e+00 : f32
    %24 = vector.broadcast %cst_9 : f32 to vector<8x32xf32>
    %25 = arith.maximumf %23, %24 : vector<8x32xf32>
    %26 = vector.extract_strided_slice %25 {offsets = [0, 1], sizes = [8, 31], strides = [1, 1]} : vector<8x32xf32> to vector<8x31xf32>
    %cst_10 = arith.constant 0.000000e+00 : f32
    %27 = vector.broadcast %cst_10 : f32 to vector<8x1xf32>
    %28 = tpu.concatenate %26, %27 in 1 : vector<8x31xf32>, vector<8x1xf32> -> vector<8x32xf32>
    %29 = arith.maximumf %25, %28 : vector<8x32xf32>
    %30 = tpu.iota {dimensions = array<i32: 0>} : vector<32x16xi32>
    %31 = tpu.iota {dimensions = array<i32: 1>} : vector<32x16xi32>
    %c2_i32 = arith.constant 2 : i32
    %32 = vector.broadcast %c2_i32 : i32 to vector<32x16xi32>
    %33 = arith.muli %32, %31 : vector<32x16xi32>
    %34 = arith.cmpi eq, %30, %33 : vector<32x16xi32>
    %35 = arith.extui %34 : vector<32x16xi1> to vector<32x16xi32>
    %36 = arith.sitofp %35 : vector<32x16xi32> to vector<32x16xf32>
    %cst_11 = arith.constant dense<0.000000e+00> : vector<8x16xf32>
    %37 = tpu.matmul %29, %36, %cst_11 {dimension_numbers = #tpu.dot_dimension_numbers<[1], [0], [0], [1], [0, 0, 1, 1], [], []>} : vector<8x32xf32>, vector<32x16xf32>, vector<8x16xf32> -> vector<8x16xf32>
    %cst_12 = arith.constant 0.000000e+00 : f32
    %38 = vector.broadcast %cst_12 : f32 to vector<8x1xf32>
    %39 = vector.extract_strided_slice %37 {offsets = [0, 0], sizes = [8, 8], strides = [1, 1]} : vector<8x16xf32> to vector<8x8xf32>
    %40 = tpu.concatenate %38, %39, %38 in 1 : vector<8x1xf32>, vector<8x8xf32>, vector<8x1xf32> -> vector<8x10xf32>
    %41 = vector.extract_strided_slice %40 {offsets = [0, 0], sizes = [8, 8], strides = [1, 1]} : vector<8x10xf32> to vector<8x8xf32>
    %42 = vector.extract_strided_slice %40 {offsets = [0, 1], sizes = [8, 8], strides = [1, 1]} : vector<8x10xf32> to vector<8x8xf32>
    %43 = vector.extract_strided_slice %40 {offsets = [0, 2], sizes = [8, 8], strides = [1, 1]} : vector<8x10xf32> to vector<8x8xf32>
    %44 = tpu.concatenate %41, %42, %43 in 0 : vector<8x8xf32>, vector<8x8xf32>, vector<8x8xf32> -> vector<24x8xf32>
    %45 = vector.extract_strided_slice %37 {offsets = [0, 8], sizes = [8, 8], strides = [1, 1]} : vector<8x16xf32> to vector<8x8xf32>
    %46 = tpu.concatenate %38, %45, %38 in 1 : vector<8x1xf32>, vector<8x8xf32>, vector<8x1xf32> -> vector<8x10xf32>
    %47 = vector.extract_strided_slice %46 {offsets = [0, 0], sizes = [8, 8], strides = [1, 1]} : vector<8x10xf32> to vector<8x8xf32>
    %48 = vector.extract_strided_slice %46 {offsets = [0, 1], sizes = [8, 8], strides = [1, 1]} : vector<8x10xf32> to vector<8x8xf32>
    %49 = vector.extract_strided_slice %46 {offsets = [0, 2], sizes = [8, 8], strides = [1, 1]} : vector<8x10xf32> to vector<8x8xf32>
    %50 = tpu.concatenate %47, %48, %49 in 0 : vector<8x8xf32>, vector<8x8xf32>, vector<8x8xf32> -> vector<24x8xf32>
    %51 = tpu.concatenate %44, %50 in 1 : vector<24x8xf32>, vector<24x8xf32> -> vector<24x16xf32>
    %c0_13 = arith.constant 0 : index
    %c0_14 = arith.constant 0 : index
    %52 = vector.load %arg3[%c0_13, %c0_14] : memref<16x24xf32, #tpu.memory_space<vmem>>, vector<16x24xf32>
    %cst_15 = arith.constant dense<0.000000e+00> : vector<16x16xf32>
    %53 = tpu.matmul %52, %51, %cst_15 {dimension_numbers = #tpu.dot_dimension_numbers<[1], [0], [0], [1], [0, 0, 1, 1], [], []>} : vector<16x24xf32>, vector<24x16xf32>, vector<16x16xf32> -> vector<16x16xf32>
    %c0_16 = arith.constant 0 : index
    %c0_17 = arith.constant 0 : index
    %54 = vector.load %arg4[%c0_16, %c0_17] : memref<16x1xf32, #tpu.memory_space<vmem>>, vector<16x1xf32>
    %55 = vector.broadcast %54 : vector<16x1xf32> to vector<16x16xf32>
    %56 = arith.addf %53, %55 : vector<16x16xf32>
    %cst_18 = arith.constant 0.000000e+00 : f32
    %57 = vector.broadcast %cst_18 : f32 to vector<16x16xf32>
    %58 = arith.maximumf %56, %57 : vector<16x16xf32>
    %59 = vector.extract_strided_slice %58 {offsets = [0, 1], sizes = [16, 15], strides = [1, 1]} : vector<16x16xf32> to vector<16x15xf32>
    %cst_19 = arith.constant 0.000000e+00 : f32
    %60 = vector.broadcast %cst_19 : f32 to vector<16x1xf32>
    %61 = tpu.concatenate %59, %60 in 1 : vector<16x15xf32>, vector<16x1xf32> -> vector<16x16xf32>
    %62 = arith.maximumf %58, %61 : vector<16x16xf32>
    %63 = tpu.iota {dimensions = array<i32: 0>} : vector<16x8xi32>
    %64 = tpu.iota {dimensions = array<i32: 1>} : vector<16x8xi32>
    %c2_i32_20 = arith.constant 2 : i32
    %65 = vector.broadcast %c2_i32_20 : i32 to vector<16x8xi32>
    %66 = arith.muli %65, %64 : vector<16x8xi32>
    %67 = arith.cmpi eq, %63, %66 : vector<16x8xi32>
    %68 = arith.extui %67 : vector<16x8xi1> to vector<16x8xi32>
    %69 = arith.sitofp %68 : vector<16x8xi32> to vector<16x8xf32>
    %cst_21 = arith.constant dense<0.000000e+00> : vector<16x8xf32>
    %70 = tpu.matmul %62, %69, %cst_21 {dimension_numbers = #tpu.dot_dimension_numbers<[1], [0], [0], [1], [0, 0, 1, 1], [], []>} : vector<16x16xf32>, vector<16x8xf32>, vector<16x8xf32> -> vector<16x8xf32>
    %71 = vector.extract_strided_slice %70 {offsets = [0, 0], sizes = [1, 4], strides = [1, 1]} : vector<16x8xf32> to vector<1x4xf32>
    %72 = vector.extract_strided_slice %70 {offsets = [1, 0], sizes = [1, 4], strides = [1, 1]} : vector<16x8xf32> to vector<1x4xf32>
    %73 = vector.extract_strided_slice %70 {offsets = [2, 0], sizes = [1, 4], strides = [1, 1]} : vector<16x8xf32> to vector<1x4xf32>
    %74 = vector.extract_strided_slice %70 {offsets = [3, 0], sizes = [1, 4], strides = [1, 1]} : vector<16x8xf32> to vector<1x4xf32>
    %75 = tpu.concatenate %71, %72, %73, %74 in 1 : vector<1x4xf32>, vector<1x4xf32>, vector<1x4xf32>, vector<1x4xf32> -> vector<1x16xf32>
    %76 = vector.extract_strided_slice %70 {offsets = [0, 4], sizes = [1, 4], strides = [1, 1]} : vector<16x8xf32> to vector<1x4xf32>
    %77 = vector.extract_strided_slice %70 {offsets = [1, 4], sizes = [1, 4], strides = [1, 1]} : vector<16x8xf32> to vector<1x4xf32>
    %78 = vector.extract_strided_slice %70 {offsets = [2, 4], sizes = [1, 4], strides = [1, 1]} : vector<16x8xf32> to vector<1x4xf32>
    %79 = vector.extract_strided_slice %70 {offsets = [3, 4], sizes = [1, 4], strides = [1, 1]} : vector<16x8xf32> to vector<1x4xf32>
    %80 = tpu.concatenate %76, %77, %78, %79 in 1 : vector<1x4xf32>, vector<1x4xf32>, vector<1x4xf32>, vector<1x4xf32> -> vector<1x16xf32>
    %81 = vector.extract_strided_slice %70 {offsets = [4, 0], sizes = [1, 4], strides = [1, 1]} : vector<16x8xf32> to vector<1x4xf32>
    %82 = vector.extract_strided_slice %70 {offsets = [5, 0], sizes = [1, 4], strides = [1, 1]} : vector<16x8xf32> to vector<1x4xf32>
    %83 = vector.extract_strided_slice %70 {offsets = [6, 0], sizes = [1, 4], strides = [1, 1]} : vector<16x8xf32> to vector<1x4xf32>
    %84 = vector.extract_strided_slice %70 {offsets = [7, 0], sizes = [1, 4], strides = [1, 1]} : vector<16x8xf32> to vector<1x4xf32>
    %85 = tpu.concatenate %81, %82, %83, %84 in 1 : vector<1x4xf32>, vector<1x4xf32>, vector<1x4xf32>, vector<1x4xf32> -> vector<1x16xf32>
    %86 = vector.extract_strided_slice %70 {offsets = [4, 4], sizes = [1, 4], strides = [1, 1]} : vector<16x8xf32> to vector<1x4xf32>
    %87 = vector.extract_strided_slice %70 {offsets = [5, 4], sizes = [1, 4], strides = [1, 1]} : vector<16x8xf32> to vector<1x4xf32>
    %88 = vector.extract_strided_slice %70 {offsets = [6, 4], sizes = [1, 4], strides = [1, 1]} : vector<16x8xf32> to vector<1x4xf32>
    %89 = vector.extract_strided_slice %70 {offsets = [7, 4], sizes = [1, 4], strides = [1, 1]} : vector<16x8xf32> to vector<1x4xf32>
    %90 = tpu.concatenate %86, %87, %88, %89 in 1 : vector<1x4xf32>, vector<1x4xf32>, vector<1x4xf32>, vector<1x4xf32> -> vector<1x16xf32>
    %91 = vector.extract_strided_slice %70 {offsets = [8, 0], sizes = [1, 4], strides = [1, 1]} : vector<16x8xf32> to vector<1x4xf32>
    %92 = vector.extract_strided_slice %70 {offsets = [9, 0], sizes = [1, 4], strides = [1, 1]} : vector<16x8xf32> to vector<1x4xf32>
    %93 = vector.extract_strided_slice %70 {offsets = [10, 0], sizes = [1, 4], strides = [1, 1]} : vector<16x8xf32> to vector<1x4xf32>
    %94 = vector.extract_strided_slice %70 {offsets = [11, 0], sizes = [1, 4], strides = [1, 1]} : vector<16x8xf32> to vector<1x4xf32>
    %95 = tpu.concatenate %91, %92, %93, %94 in 1 : vector<1x4xf32>, vector<1x4xf32>, vector<1x4xf32>, vector<1x4xf32> -> vector<1x16xf32>
    %96 = vector.extract_strided_slice %70 {offsets = [8, 4], sizes = [1, 4], strides = [1, 1]} : vector<16x8xf32> to vector<1x4xf32>
    %97 = vector.extract_strided_slice %70 {offsets = [9, 4], sizes = [1, 4], strides = [1, 1]} : vector<16x8xf32> to vector<1x4xf32>
    %98 = vector.extract_strided_slice %70 {offsets = [10, 4], sizes = [1, 4], strides = [1, 1]} : vector<16x8xf32> to vector<1x4xf32>
    %99 = vector.extract_strided_slice %70 {offsets = [11, 4], sizes = [1, 4], strides = [1, 1]} : vector<16x8xf32> to vector<1x4xf32>
    %100 = tpu.concatenate %96, %97, %98, %99 in 1 : vector<1x4xf32>, vector<1x4xf32>, vector<1x4xf32>, vector<1x4xf32> -> vector<1x16xf32>
    %101 = vector.extract_strided_slice %70 {offsets = [12, 0], sizes = [1, 4], strides = [1, 1]} : vector<16x8xf32> to vector<1x4xf32>
    %102 = vector.extract_strided_slice %70 {offsets = [13, 0], sizes = [1, 4], strides = [1, 1]} : vector<16x8xf32> to vector<1x4xf32>
    %103 = vector.extract_strided_slice %70 {offsets = [14, 0], sizes = [1, 4], strides = [1, 1]} : vector<16x8xf32> to vector<1x4xf32>
    %104 = vector.extract_strided_slice %70 {offsets = [15, 0], sizes = [1, 4], strides = [1, 1]} : vector<16x8xf32> to vector<1x4xf32>
    %105 = tpu.concatenate %101, %102, %103, %104 in 1 : vector<1x4xf32>, vector<1x4xf32>, vector<1x4xf32>, vector<1x4xf32> -> vector<1x16xf32>
    %106 = vector.extract_strided_slice %70 {offsets = [12, 4], sizes = [1, 4], strides = [1, 1]} : vector<16x8xf32> to vector<1x4xf32>
    %107 = vector.extract_strided_slice %70 {offsets = [13, 4], sizes = [1, 4], strides = [1, 1]} : vector<16x8xf32> to vector<1x4xf32>
    %108 = vector.extract_strided_slice %70 {offsets = [14, 4], sizes = [1, 4], strides = [1, 1]} : vector<16x8xf32> to vector<1x4xf32>
    %109 = vector.extract_strided_slice %70 {offsets = [15, 4], sizes = [1, 4], strides = [1, 1]} : vector<16x8xf32> to vector<1x4xf32>
    %110 = tpu.concatenate %106, %107, %108, %109 in 1 : vector<1x4xf32>, vector<1x4xf32>, vector<1x4xf32>, vector<1x4xf32> -> vector<1x16xf32>
    %111 = tpu.concatenate %75, %80, %85, %90, %95, %100, %105, %110 in 0 : vector<1x16xf32>, vector<1x16xf32>, vector<1x16xf32>, vector<1x16xf32>, vector<1x16xf32>, vector<1x16xf32>, vector<1x16xf32>, vector<1x16xf32> -> vector<8x16xf32>
    %c0_22 = arith.constant 0 : index
    %c0_23 = arith.constant 0 : index
    %112 = vector.load %arg5[%c0_22, %c0_23] : memref<16x128xf32, #tpu.memory_space<vmem>>, vector<16x128xf32>
    %cst_24 = arith.constant dense<0.000000e+00> : vector<8x128xf32>
    %113 = tpu.matmul %111, %112, %cst_24 {dimension_numbers = #tpu.dot_dimension_numbers<[1], [0], [0], [1], [0, 0, 1, 1], [], []>} : vector<8x16xf32>, vector<16x128xf32>, vector<8x128xf32> -> vector<8x128xf32>
    %c0_25 = arith.constant 0 : index
    %c0_26 = arith.constant 0 : index
    %114 = vector.load %arg7[%c0_25, %c0_26] : memref<1x128xf32, #tpu.memory_space<vmem>>, vector<1x128xf32>
    %115 = vector.broadcast %114 : vector<1x128xf32> to vector<8x128xf32>
    %116 = arith.addf %113, %115 : vector<8x128xf32>
    %c0_27 = arith.constant 0 : index
    %c0_28 = arith.constant 0 : index
    %117 = vector.load %arg6[%c0_27, %c0_28] : memref<32x128xf32, #tpu.memory_space<vmem>>, vector<32x128xf32>
    %c0_29 = arith.constant 0 : index
    %c0_30 = arith.constant 0 : index
    %118 = vector.load %arg8[%c0_29, %c0_30] : memref<64x128xf32, #tpu.memory_space<vmem>>, vector<64x128xf32>
    %c0_31 = arith.constant 0 : index
    %c0_32 = arith.constant 0 : index
    %119 = vector.load %arg9[%c0_31, %c0_32] : memref<1x128xf32, #tpu.memory_space<vmem>>, vector<1x128xf32>
    %cst_33 = arith.constant 0.000000e+00 : f32
    %120 = vector.broadcast %cst_33 : f32 to vector<2x32xf32>
    %cst_34 = arith.constant 0.000000e+00 : f32
    %121 = vector.broadcast %cst_34 : f32 to vector<2x32xf32>
    %cst_35 = arith.constant 0.000000e+00 : f32
    %122 = vector.broadcast %cst_35 : f32 to vector<2x32xf32>
    %cst_36 = arith.constant 0.000000e+00 : f32
    %123 = vector.broadcast %cst_36 : f32 to vector<2x32xf32>
    %124 = vector.extract_strided_slice %116 {offsets = [0, 0], sizes = [2, 128], strides = [1, 1]} : vector<8x128xf32> to vector<2x128xf32>
    %cst_37 = arith.constant dense<0.000000e+00> : vector<2x128xf32>
    %125 = tpu.matmul %120, %117, %cst_37 {dimension_numbers = #tpu.dot_dimension_numbers<[1], [0], [0], [1], [0, 0, 1, 1], [], []>} : vector<2x32xf32>, vector<32x128xf32>, vector<2x128xf32> -> vector<2x128xf32>
    %126 = arith.addf %124, %125 : vector<2x128xf32>
    %127 = vector.extract_strided_slice %126 {offsets = [0, 0], sizes = [2, 96], strides = [1, 1]} : vector<2x128xf32> to vector<2x96xf32>
    %128 = arith.negf %127 : vector<2x96xf32>
    %129 = math.exp %128 : vector<2x96xf32>
    %cst_38 = arith.constant 1.000000e+00 : f32
    %130 = vector.broadcast %cst_38 : f32 to vector<2x96xf32>
    %131 = arith.addf %130, %129 : vector<2x96xf32>
    %132 = arith.divf %130, %131 : vector<2x96xf32>
    %133 = vector.extract_strided_slice %126 {offsets = [0, 96], sizes = [2, 32], strides = [1, 1]} : vector<2x128xf32> to vector<2x32xf32>
    %134 = math.tanh %133 : vector<2x32xf32>
    %135 = vector.extract_strided_slice %132 {offsets = [0, 32], sizes = [2, 32], strides = [1, 1]} : vector<2x96xf32> to vector<2x32xf32>
    %136 = arith.mulf %135, %122 : vector<2x32xf32>
    %137 = vector.extract_strided_slice %132 {offsets = [0, 0], sizes = [2, 32], strides = [1, 1]} : vector<2x96xf32> to vector<2x32xf32>
    %138 = arith.mulf %137, %134 : vector<2x32xf32>
    %139 = arith.addf %136, %138 : vector<2x32xf32>
    %140 = vector.extract_strided_slice %132 {offsets = [0, 64], sizes = [2, 32], strides = [1, 1]} : vector<2x96xf32> to vector<2x32xf32>
    %141 = math.tanh %139 : vector<2x32xf32>
    %142 = arith.mulf %140, %141 : vector<2x32xf32>
    %143 = vector.extract_strided_slice %116 {offsets = [2, 0], sizes = [2, 128], strides = [1, 1]} : vector<8x128xf32> to vector<2x128xf32>
    %cst_39 = arith.constant dense<0.000000e+00> : vector<2x128xf32>
    %144 = tpu.matmul %142, %117, %cst_39 {dimension_numbers = #tpu.dot_dimension_numbers<[1], [0], [0], [1], [0, 0, 1, 1], [], []>} : vector<2x32xf32>, vector<32x128xf32>, vector<2x128xf32> -> vector<2x128xf32>
    %145 = arith.addf %143, %144 : vector<2x128xf32>
    %146 = vector.extract_strided_slice %145 {offsets = [0, 0], sizes = [2, 96], strides = [1, 1]} : vector<2x128xf32> to vector<2x96xf32>
    %147 = arith.negf %146 : vector<2x96xf32>
    %148 = math.exp %147 : vector<2x96xf32>
    %cst_40 = arith.constant 1.000000e+00 : f32
    %149 = vector.broadcast %cst_40 : f32 to vector<2x96xf32>
    %150 = arith.addf %149, %148 : vector<2x96xf32>
    %151 = arith.divf %149, %150 : vector<2x96xf32>
    %152 = vector.extract_strided_slice %145 {offsets = [0, 96], sizes = [2, 32], strides = [1, 1]} : vector<2x128xf32> to vector<2x32xf32>
    %153 = math.tanh %152 : vector<2x32xf32>
    %154 = vector.extract_strided_slice %151 {offsets = [0, 32], sizes = [2, 32], strides = [1, 1]} : vector<2x96xf32> to vector<2x32xf32>
    %155 = arith.mulf %154, %139 : vector<2x32xf32>
    %156 = vector.extract_strided_slice %151 {offsets = [0, 0], sizes = [2, 32], strides = [1, 1]} : vector<2x96xf32> to vector<2x32xf32>
    %157 = arith.mulf %156, %153 : vector<2x32xf32>
    %158 = arith.addf %155, %157 : vector<2x32xf32>
    %159 = vector.extract_strided_slice %151 {offsets = [0, 64], sizes = [2, 32], strides = [1, 1]} : vector<2x96xf32> to vector<2x32xf32>
    %160 = math.tanh %158 : vector<2x32xf32>
    %161 = arith.mulf %159, %160 : vector<2x32xf32>
    %162 = tpu.concatenate %142, %121 in 1 : vector<2x32xf32>, vector<2x32xf32> -> vector<2x64xf32>
    %cst_41 = arith.constant dense<0.000000e+00> : vector<2x128xf32>
    %163 = tpu.matmul %162, %118, %cst_41 {dimension_numbers = #tpu.dot_dimension_numbers<[1], [0], [0], [1], [0, 0, 1, 1], [], []>} : vector<2x64xf32>, vector<64x128xf32>, vector<2x128xf32> -> vector<2x128xf32>
    %164 = vector.broadcast %119 : vector<1x128xf32> to vector<2x128xf32>
    %165 = arith.addf %163, %164 : vector<2x128xf32>
    %166 = vector.extract_strided_slice %165 {offsets = [0, 0], sizes = [2, 96], strides = [1, 1]} : vector<2x128xf32> to vector<2x96xf32>
    %167 = arith.negf %166 : vector<2x96xf32>
    %168 = math.exp %167 : vector<2x96xf32>
    %cst_42 = arith.constant 1.000000e+00 : f32
    %169 = vector.broadcast %cst_42 : f32 to vector<2x96xf32>
    %170 = arith.addf %169, %168 : vector<2x96xf32>
    %171 = arith.divf %169, %170 : vector<2x96xf32>
    %172 = vector.extract_strided_slice %165 {offsets = [0, 96], sizes = [2, 32], strides = [1, 1]} : vector<2x128xf32> to vector<2x32xf32>
    %173 = math.tanh %172 : vector<2x32xf32>
    %174 = vector.extract_strided_slice %171 {offsets = [0, 32], sizes = [2, 32], strides = [1, 1]} : vector<2x96xf32> to vector<2x32xf32>
    %175 = arith.mulf %174, %123 : vector<2x32xf32>
    %176 = vector.extract_strided_slice %171 {offsets = [0, 0], sizes = [2, 32], strides = [1, 1]} : vector<2x96xf32> to vector<2x32xf32>
    %177 = arith.mulf %176, %173 : vector<2x32xf32>
    %178 = arith.addf %175, %177 : vector<2x32xf32>
    %179 = vector.extract_strided_slice %171 {offsets = [0, 64], sizes = [2, 32], strides = [1, 1]} : vector<2x96xf32> to vector<2x32xf32>
    %180 = math.tanh %178 : vector<2x32xf32>
    %181 = arith.mulf %179, %180 : vector<2x32xf32>
    %182 = vector.extract_strided_slice %116 {offsets = [4, 0], sizes = [2, 128], strides = [1, 1]} : vector<8x128xf32> to vector<2x128xf32>
    %cst_43 = arith.constant dense<0.000000e+00> : vector<2x128xf32>
    %183 = tpu.matmul %161, %117, %cst_43 {dimension_numbers = #tpu.dot_dimension_numbers<[1], [0], [0], [1], [0, 0, 1, 1], [], []>} : vector<2x32xf32>, vector<32x128xf32>, vector<2x128xf32> -> vector<2x128xf32>
    %184 = arith.addf %182, %183 : vector<2x128xf32>
    %185 = vector.extract_strided_slice %184 {offsets = [0, 0], sizes = [2, 96], strides = [1, 1]} : vector<2x128xf32> to vector<2x96xf32>
    %186 = arith.negf %185 : vector<2x96xf32>
    %187 = math.exp %186 : vector<2x96xf32>
    %cst_44 = arith.constant 1.000000e+00 : f32
    %188 = vector.broadcast %cst_44 : f32 to vector<2x96xf32>
    %189 = arith.addf %188, %187 : vector<2x96xf32>
    %190 = arith.divf %188, %189 : vector<2x96xf32>
    %191 = vector.extract_strided_slice %184 {offsets = [0, 96], sizes = [2, 32], strides = [1, 1]} : vector<2x128xf32> to vector<2x32xf32>
    %192 = math.tanh %191 : vector<2x32xf32>
    %193 = vector.extract_strided_slice %190 {offsets = [0, 32], sizes = [2, 32], strides = [1, 1]} : vector<2x96xf32> to vector<2x32xf32>
    %194 = arith.mulf %193, %158 : vector<2x32xf32>
    %195 = vector.extract_strided_slice %190 {offsets = [0, 0], sizes = [2, 32], strides = [1, 1]} : vector<2x96xf32> to vector<2x32xf32>
    %196 = arith.mulf %195, %192 : vector<2x32xf32>
    %197 = arith.addf %194, %196 : vector<2x32xf32>
    %198 = vector.extract_strided_slice %190 {offsets = [0, 64], sizes = [2, 32], strides = [1, 1]} : vector<2x96xf32> to vector<2x32xf32>
    %199 = math.tanh %197 : vector<2x32xf32>
    %200 = arith.mulf %198, %199 : vector<2x32xf32>
    %201 = tpu.concatenate %161, %181 in 1 : vector<2x32xf32>, vector<2x32xf32> -> vector<2x64xf32>
    %cst_45 = arith.constant dense<0.000000e+00> : vector<2x128xf32>
    %202 = tpu.matmul %201, %118, %cst_45 {dimension_numbers = #tpu.dot_dimension_numbers<[1], [0], [0], [1], [0, 0, 1, 1], [], []>} : vector<2x64xf32>, vector<64x128xf32>, vector<2x128xf32> -> vector<2x128xf32>
    %203 = vector.broadcast %119 : vector<1x128xf32> to vector<2x128xf32>
    %204 = arith.addf %202, %203 : vector<2x128xf32>
    %205 = vector.extract_strided_slice %204 {offsets = [0, 0], sizes = [2, 96], strides = [1, 1]} : vector<2x128xf32> to vector<2x96xf32>
    %206 = arith.negf %205 : vector<2x96xf32>
    %207 = math.exp %206 : vector<2x96xf32>
    %cst_46 = arith.constant 1.000000e+00 : f32
    %208 = vector.broadcast %cst_46 : f32 to vector<2x96xf32>
    %209 = arith.addf %208, %207 : vector<2x96xf32>
    %210 = arith.divf %208, %209 : vector<2x96xf32>
    %211 = vector.extract_strided_slice %204 {offsets = [0, 96], sizes = [2, 32], strides = [1, 1]} : vector<2x128xf32> to vector<2x32xf32>
    %212 = math.tanh %211 : vector<2x32xf32>
    %213 = vector.extract_strided_slice %210 {offsets = [0, 32], sizes = [2, 32], strides = [1, 1]} : vector<2x96xf32> to vector<2x32xf32>
    %214 = arith.mulf %213, %178 : vector<2x32xf32>
    %215 = vector.extract_strided_slice %210 {offsets = [0, 0], sizes = [2, 32], strides = [1, 1]} : vector<2x96xf32> to vector<2x32xf32>
    %216 = arith.mulf %215, %212 : vector<2x32xf32>
    %217 = arith.addf %214, %216 : vector<2x32xf32>
    %218 = vector.extract_strided_slice %210 {offsets = [0, 64], sizes = [2, 32], strides = [1, 1]} : vector<2x96xf32> to vector<2x32xf32>
    %219 = math.tanh %217 : vector<2x32xf32>
    %220 = arith.mulf %218, %219 : vector<2x32xf32>
    %221 = vector.extract_strided_slice %116 {offsets = [6, 0], sizes = [2, 128], strides = [1, 1]} : vector<8x128xf32> to vector<2x128xf32>
    %cst_47 = arith.constant dense<0.000000e+00> : vector<2x128xf32>
    %222 = tpu.matmul %200, %117, %cst_47 {dimension_numbers = #tpu.dot_dimension_numbers<[1], [0], [0], [1], [0, 0, 1, 1], [], []>} : vector<2x32xf32>, vector<32x128xf32>, vector<2x128xf32> -> vector<2x128xf32>
    %223 = arith.addf %221, %222 : vector<2x128xf32>
    %224 = vector.extract_strided_slice %223 {offsets = [0, 0], sizes = [2, 96], strides = [1, 1]} : vector<2x128xf32> to vector<2x96xf32>
    %225 = arith.negf %224 : vector<2x96xf32>
    %226 = math.exp %225 : vector<2x96xf32>
    %cst_48 = arith.constant 1.000000e+00 : f32
    %227 = vector.broadcast %cst_48 : f32 to vector<2x96xf32>
    %228 = arith.addf %227, %226 : vector<2x96xf32>
    %229 = arith.divf %227, %228 : vector<2x96xf32>
    %230 = vector.extract_strided_slice %223 {offsets = [0, 96], sizes = [2, 32], strides = [1, 1]} : vector<2x128xf32> to vector<2x32xf32>
    %231 = math.tanh %230 : vector<2x32xf32>
    %232 = vector.extract_strided_slice %229 {offsets = [0, 32], sizes = [2, 32], strides = [1, 1]} : vector<2x96xf32> to vector<2x32xf32>
    %233 = arith.mulf %232, %197 : vector<2x32xf32>
    %234 = vector.extract_strided_slice %229 {offsets = [0, 0], sizes = [2, 32], strides = [1, 1]} : vector<2x96xf32> to vector<2x32xf32>
    %235 = arith.mulf %234, %231 : vector<2x32xf32>
    %236 = arith.addf %233, %235 : vector<2x32xf32>
    %237 = vector.extract_strided_slice %229 {offsets = [0, 64], sizes = [2, 32], strides = [1, 1]} : vector<2x96xf32> to vector<2x32xf32>
    %238 = math.tanh %236 : vector<2x32xf32>
    %239 = arith.mulf %237, %238 : vector<2x32xf32>
    %240 = tpu.concatenate %200, %220 in 1 : vector<2x32xf32>, vector<2x32xf32> -> vector<2x64xf32>
    %cst_49 = arith.constant dense<0.000000e+00> : vector<2x128xf32>
    %241 = tpu.matmul %240, %118, %cst_49 {dimension_numbers = #tpu.dot_dimension_numbers<[1], [0], [0], [1], [0, 0, 1, 1], [], []>} : vector<2x64xf32>, vector<64x128xf32>, vector<2x128xf32> -> vector<2x128xf32>
    %242 = vector.broadcast %119 : vector<1x128xf32> to vector<2x128xf32>
    %243 = arith.addf %241, %242 : vector<2x128xf32>
    %244 = vector.extract_strided_slice %243 {offsets = [0, 0], sizes = [2, 96], strides = [1, 1]} : vector<2x128xf32> to vector<2x96xf32>
    %245 = arith.negf %244 : vector<2x96xf32>
    %246 = math.exp %245 : vector<2x96xf32>
    %cst_50 = arith.constant 1.000000e+00 : f32
    %247 = vector.broadcast %cst_50 : f32 to vector<2x96xf32>
    %248 = arith.addf %247, %246 : vector<2x96xf32>
    %249 = arith.divf %247, %248 : vector<2x96xf32>
    %250 = vector.extract_strided_slice %243 {offsets = [0, 96], sizes = [2, 32], strides = [1, 1]} : vector<2x128xf32> to vector<2x32xf32>
    %251 = math.tanh %250 : vector<2x32xf32>
    %252 = vector.extract_strided_slice %249 {offsets = [0, 32], sizes = [2, 32], strides = [1, 1]} : vector<2x96xf32> to vector<2x32xf32>
    %253 = arith.mulf %252, %217 : vector<2x32xf32>
    %254 = vector.extract_strided_slice %249 {offsets = [0, 0], sizes = [2, 32], strides = [1, 1]} : vector<2x96xf32> to vector<2x32xf32>
    %255 = arith.mulf %254, %251 : vector<2x32xf32>
    %256 = arith.addf %253, %255 : vector<2x32xf32>
    %257 = vector.extract_strided_slice %249 {offsets = [0, 64], sizes = [2, 32], strides = [1, 1]} : vector<2x96xf32> to vector<2x32xf32>
    %258 = math.tanh %256 : vector<2x32xf32>
    %259 = arith.mulf %257, %258 : vector<2x32xf32>
    %260 = tpu.concatenate %239, %259 in 1 : vector<2x32xf32>, vector<2x32xf32> -> vector<2x64xf32>
    %cst_51 = arith.constant dense<0.000000e+00> : vector<2x128xf32>
    %261 = tpu.matmul %260, %118, %cst_51 {dimension_numbers = #tpu.dot_dimension_numbers<[1], [0], [0], [1], [0, 0, 1, 1], [], []>} : vector<2x64xf32>, vector<64x128xf32>, vector<2x128xf32> -> vector<2x128xf32>
    %262 = vector.broadcast %119 : vector<1x128xf32> to vector<2x128xf32>
    %263 = arith.addf %261, %262 : vector<2x128xf32>
    %264 = vector.extract_strided_slice %263 {offsets = [0, 0], sizes = [2, 96], strides = [1, 1]} : vector<2x128xf32> to vector<2x96xf32>
    %265 = arith.negf %264 : vector<2x96xf32>
    %266 = math.exp %265 : vector<2x96xf32>
    %cst_52 = arith.constant 1.000000e+00 : f32
    %267 = vector.broadcast %cst_52 : f32 to vector<2x96xf32>
    %268 = arith.addf %267, %266 : vector<2x96xf32>
    %269 = arith.divf %267, %268 : vector<2x96xf32>
    %270 = vector.extract_strided_slice %263 {offsets = [0, 96], sizes = [2, 32], strides = [1, 1]} : vector<2x128xf32> to vector<2x32xf32>
    %271 = math.tanh %270 : vector<2x32xf32>
    %272 = vector.extract_strided_slice %269 {offsets = [0, 32], sizes = [2, 32], strides = [1, 1]} : vector<2x96xf32> to vector<2x32xf32>
    %273 = arith.mulf %272, %256 : vector<2x32xf32>
    %274 = vector.extract_strided_slice %269 {offsets = [0, 0], sizes = [2, 32], strides = [1, 1]} : vector<2x96xf32> to vector<2x32xf32>
    %275 = arith.mulf %274, %271 : vector<2x32xf32>
    %276 = arith.addf %273, %275 : vector<2x32xf32>
    %277 = vector.extract_strided_slice %269 {offsets = [0, 64], sizes = [2, 32], strides = [1, 1]} : vector<2x96xf32> to vector<2x32xf32>
    %278 = math.tanh %276 : vector<2x32xf32>
    %279 = arith.mulf %277, %278 : vector<2x32xf32>
    %280 = tpu.concatenate %181, %220, %259, %279 in 1 : vector<2x32xf32>, vector<2x32xf32>, vector<2x32xf32>, vector<2x32xf32> -> vector<2x128xf32>
    %c0_53 = arith.constant 0 : index
    %c0_54 = arith.constant 0 : index
    %281 = vector.load %arg10[%c0_53, %c0_54] : memref<128x128xf32, #tpu.memory_space<vmem>>, vector<128x128xf32>
    %cst_55 = arith.constant dense<0.000000e+00> : vector<2x128xf32>
    %282 = tpu.matmul %280, %281, %cst_55 {dimension_numbers = #tpu.dot_dimension_numbers<[1], [0], [0], [1], [0, 0, 1, 1], [], []>} : vector<2x128xf32>, vector<128x128xf32>, vector<2x128xf32> -> vector<2x128xf32>
    %c0_56 = arith.constant 0 : index
    %c0_57 = arith.constant 0 : index
    %283 = vector.load %arg11[%c0_56, %c0_57] : memref<1x128xf32, #tpu.memory_space<vmem>>, vector<1x128xf32>
    %284 = vector.broadcast %283 : vector<1x128xf32> to vector<2x128xf32>
    %285 = arith.addf %282, %284 : vector<2x128xf32>
    %cst_58 = arith.constant 0.000000e+00 : f32
    %286 = vector.broadcast %cst_58 : f32 to vector<2x128xf32>
    %287 = arith.maximumf %285, %286 : vector<2x128xf32>
    %c0_59 = arith.constant 0 : index
    %c0_60 = arith.constant 0 : index
    %288 = vector.load %arg12[%c0_59, %c0_60] : memref<128x5xf32, #tpu.memory_space<vmem>>, vector<128x5xf32>
    %cst_61 = arith.constant dense<0.000000e+00> : vector<2x5xf32>
    %289 = tpu.matmul %287, %288, %cst_61 {dimension_numbers = #tpu.dot_dimension_numbers<[1], [0], [0], [1], [0, 0, 1, 1], [], []>} : vector<2x128xf32>, vector<128x5xf32>, vector<2x5xf32> -> vector<2x5xf32>
    %c0_62 = arith.constant 0 : index
    %c0_63 = arith.constant 0 : index
    %290 = vector.load %arg13[%c0_62, %c0_63] : memref<1x5xf32, #tpu.memory_space<vmem>>, vector<1x5xf32>
    %291 = vector.broadcast %290 : vector<1x5xf32> to vector<2x5xf32>
    %292 = arith.addf %289, %291 : vector<2x5xf32>
    %c0_64 = arith.constant 0 : index
    %c0_65 = arith.constant 0 : index
    %293 = vector.load %arg14[%c0_64, %c0_65] : memref<2x5xf32, #tpu.memory_space<vmem>>, vector<2x5xf32>
    tpu.vector_store %arg14[%c0_64, %c0_65], %292 {strides = array<i32>} : memref<2x5xf32, #tpu.memory_space<vmem>>, vector<2x5xf32>,
    return
  }
}

</mosaic_0001>

<bundles_post_ra>
// kernel: flexible_lstm_forward.1
= control target key start
LH: loop header
LB: loop body
LE: loop exit
PB: predicated region body
PF: predicated region fallthrough
CT: control target
= control target key end

     0   :  { %19 = vsyncpa [#allocation3], 0  ;;  %s3258_s0 = inlined_call_operand.vmem [shape: f32[2,23,16], index: 0, kind: input, shape index: {}]   ;;  %s3259_s1 = inlined_call_operand.hbm [shape: f32[8,69], index: 1, kind: input, shape index: {}]   ;;  %s3260_s2 = inlined_call_operand.vmem [shape: f32[8,1], index: 2, kind: input, shape index: {}]   ;;  %s3261_s3 = inlined_call_operand.vmem [shape: f32[16,24], index: 3, kind: input, shape index: {}]   ;;  %s3262_s4 = inlined_call_operand.vmem [shape: f32[16,1], index: 4, kind: input, shape index: {}]   ;;  %s3263_s5 = inlined_call_operand.vmem [shape: f32[16,128], index: 5, kind: input, shape index: {}]   ;;  %s3264_s6 = inlined_call_operand.vmem [shape: f32[32,128], index: 6, kind: input, shape index: {}]   ;;  %s3265_s7 = inlined_call_operand.hbm [shape: f32[1,128], index: 7, kind: input, shape index: {}]   ;;  %s3266_s8 = inlined_call_operand.vmem [shape: f32[64,128], index: 8, kind: input, shape index: {}]   ;;  %s3267_s9 = inlined_call_operand.hbm [shape: f32[1,128], index: 9, kind: input, shape index: {}]   ;;  %s3268_s10 = inlined_call_operand.vmem [shape: f32[128,128], index: 10, kind: input, shape index: {}]   ;;  %s3269_s11 = inlined_call_operand.vmem [shape: f32[1,128], index: 11, kind: input, shape index: {}]   ;;  %s3270_s12 = inlined_call_operand.vmem [shape: f32[128,5], index: 12, kind: input, shape index: {}]   ;;  %s3271_s13 = inlined_call_operand.vmem [shape: f32[1,5], index: 13, kind: input, shape index: {}]   ;;  %s3272_s14 = inlined_call_operand.hbm [shape: f32[2,5], index: 14, kind: output, shape index: {}]  }
   0x1   :  { %20 = vsyncpa [#allocation6], 0 }
   0x2   :  { %21 = vsyncpa [#allocation4], 0  ;;  %s2494_s29 = smov [#allocation5]   ;;  %s2495_s15 = smov [#allocation2]  }
   0x3   :  { %s50_s30 = sshll.u32 %s2494_s29, 4  ;;  %s30_s16 = sshll.u32 %s2495_s15, 4  ;;  %s51_s30 = int_to_ptr.vmem [resolvable:$true] %s50_s30  ;;  %s31_s16 = int_to_ptr.vmem [resolvable:$true] %s30_s16 }
   0x4   :  { %s2416_s17 = scalar_lea.vmem %s51_s30, 16  ;;  %s2420_s18 = scalar_lea.vmem %s51_s30, 32 }
   0x5   :  { %p2417_p0 = scmp.ne.s32.totalorder %s51_s30, %s2416_s17  ;;  %p2421_p1 = scmp.lt.s32.totalorder %s51_s30, %s51_s30 }
   0x6   :  { %p2422_p2 = scmp.lt.s32.totalorder %s2420_s18, %s2416_s17 }
   0x8   :  { %p2423_p3 = por %p2422_p2, %p2421_p1 }
   0xa   :  { %p2424_p4 = pnand %p2423_p3, %p2417_p0 }
   0xc   :  { %2427 = shalt.err (!%p2424_p4)
}
   0xd   :  { %53 = dma.hbm_to_vmem [thread:$0]  %s3265_s7, 16, %s51_s30, [#allocation6]  }
   0xe   :  { %s2436_s21 = scalar_lea.vmem %s31_s16, 128  ;;  %p2441_p6 = scmp.lt.s32.totalorder %s31_s16, %s31_s16 }
   0xf   :  { %p2437_p5 = scmp.ne.s32.totalorder %s31_s16, %s2436_s21  ;;  %p2442_p7 = scmp.lt.s32.totalorder %s2436_s21, %s2436_s21 }
  0x11   :  { %p2443_p8 = por %p2442_p7, %p2441_p6 }
  0x13   :  { %p2444_p9 = pnand %p2443_p8, %p2437_p5 }
  0x15   :  { %2447 = shalt.err (!%p2444_p9)
}
  0x16   :  { %33 = dma.hbm_to_vmem [thread:$0]  %s3259_s1, 128, %s31_s16, [#allocation3]  }
  0x17   :  { %s2496_s24 = smov [#allocation7]  }
  0x18   :  { %s62_s25 = sshll.u32 %s2496_s24, 4  ;;  %s63_s25 = int_to_ptr.vmem [resolvable:$true] %s62_s25 }
  0x19   :  { %s2456_s26 = scalar_lea.vmem %s63_s25, 16  ;;  %s2460_s27 = scalar_lea.vmem %s63_s25, 32 }
  0x1a   :  { %p2457_p10 = scmp.ne.s32.totalorder %s63_s25, %s2456_s26  ;;  %p2461_p11 = scmp.lt.s32.totalorder %s63_s25, %s63_s25 }
  0x1b   :  { %p2462_p12 = scmp.lt.s32.totalorder %s2460_s27, %s2456_s26 }
  0x1d   :  { %p2463_p13 = por %p2462_p12, %p2461_p11 }
  0x1f   :  { %p2464_p0 = pnand %p2463_p13, %p2457_p10 }
  0x21   :  { %2467 = shalt.err (!%p2464_p0)
}
  0x22   :  { %65 = dma.hbm_to_vmem [thread:$0]  %s3267_s9, 16, %s63_s25, [#allocation6]  }
  0x23   :  { %2488 = dma.done.wait [#allocation3], 128  }
  0x24   :  { %2489 = vsyncadd [#allocation3], 4294967168 }
  0x25   :  { %2490 = dma.done.wait [#allocation6], 32  }
  0x26   :  { %2491 = vsyncadd [#allocation6], 4294967264  ;;  %v1921_v0 = vld [vmem:[%s3258_s0 + $0x28] sm:$0x7f]  ;;  %v1919_v1 = vld [vmem:[%s3258_s0 + $0x18] sm:$0xff]  ;;  %s2497_s16 = smov 16  }
  0x27   :  { %97 = vrot.lane.b32.xlu0 %v1921_v0, %s2497_s16  ;;  %93 = vrot.lane.b32.xlu1 %v1919_v1, %s2497_s16  ;;  %v1920_v2 = vld [vmem:[%s3258_s0 + $0x20] sm:$0xff]  ;;  %v85_v3 = vld [vmem:[%s3258_s0 + $0x10] sm:$0x7f]  ;;  %vm102_vm0 = vcmask 130048   ;;  %s2498_s22 = smov 113   ;;  %s2499_s25 = smov 1  }
  0x28   :  { %v83_v6 = vld [vmem:[%s3258_s0] sm:$0xff]  ;;  %v84_v8 = vld [vmem:[%s3258_s0 + $0x8] sm:$0xff]  ;;  %vm118_vm1 = vcmask 7168   ;;  %vm122_vm2 = vcmask 138240   ;;  %s2500_s0 = smov 126   ;;  %vm147_vm3 = vcmask 1045504  }
  0x29   :  { %s2501_s26 = smov 127   ;;  %vm129_vm4 = vcmask 1046528   ;;  %v2502_v48 = vmov 0.0   ;;  %vm2503_vm5 = vmmov 0   ;;  %v2504_v58 = vmov 0   ;;  %v255_v62 = vld [vmem:[%s3260_s2] sm:$0xff] }
  0x2a   :  { %2076 = vmatprep.subr.mxu0 %v2502_v48  ;;  %2097 = vmatprep.subr.mxu1 %v2502_v48  ;;  %vm265_vm6 = vcmask 1044480   ;;  %vm261_vm7 = vcmask 564224   ;;  %vm344_vm12 = vcmask 252928   ;;  %vm367_vm13 = vcmask 261120   ;;  %s2506_s2 = smov 121   ;;  %s2507_s28 = smov 8  }
  0x2b   :  { %95 = vrot.lane.b32.xlu0 %v1920_v2, %s2497_s16  ;;  %2094 = vmatprep.mubr.msk.f32.mxu0 %vm2503_vm5, %v2502_v48  ;;  %vm446_vm14 = vcmask 72704   ;;  %vm492_vm15 = vcmask 195584   ;;  %s2510_s19 = smov 4   ;;  %s2512_s24 = smov 64  }
  0x2c   :  { %2105 = vmatprep.mubr.msk.f32.mxu1 %vm2503_vm5, %v2502_v48  ;;  %2342 = vset.pattern.permute.xlu0 %v2504_v58  ;;  %s2514_s9 = smov [#allocation8]  }
  0x2d   :  { %2343 = vset.pattern.permute.xlu1 %v2504_v58 }
  0x99   :  { %v98_v4 = vpop.permute.xlu0 %97  ;;  %v94_v5 = vpop.permute.xlu1 %93 }
  0x9a   :  { %v105_v7 = vsel %vm102_vm0, %v85_v3, %v98_v4  ;;  %v103_v9 = vsel %vm102_vm0, %v83_v6, %v94_v5 }
  0x9b   :  { %171 = vrot.lane.b32.xlu1 %v105_v7, %s2498_s22 }
  0x9d   :  { %v96_v10 = vpop.permute.xlu0 %95 }
  0x9e   :  { %v104_v11 = vsel %vm102_vm0, %v84_v8, %v96_v10 }
  0x9f   :  { %169 = vrot.lane.b32.xlu0 %v104_v11, %s2498_s22  ;;  %167 = vrot.lane.b32.xlu1 %v103_v9, %s2498_s22 }
  0xa3   :  { %113 = vrot.lane.b32.xlu0 %v105_v7, %s2499_s25  ;;  %111 = vrot.lane.b32.xlu1 %v104_v11, %s2499_s25 }
  0xa7   :  { %109 = vrot.lane.b32.xlu0 %v103_v9, %s2499_s25 }
 0x10d   :  { %v172_v12 = vpop.permute.xlu1 %171 }
 0x10e   :  { %v178_v13 = vsel %vm118_vm1, 0.0, %v172_v12 }
 0x10f   :  { %v2628_v14 = vsel %vm122_vm2, %v178_v13, 0.0 }
 0x110   :  { %v203_v15 = vrot.slane %v2628_v14, 2  ;;  %v188_v27 = vrot.slane %v2628_v14, 1 }
 0x111   :  { %v170_v16 = vpop.permute.xlu0 %169  ;;  %v168_v17 = vpop.permute.xlu1 %167 }
 0x112   :  { %v177_v18 = vsel %vm118_vm1, 0.0, %v170_v16  ;;  %v176_v19 = vsel %vm118_vm1, 0.0, %v168_v17  ;;  %211 = vrot.lane.b32.xlu1 %v203_v15, %s2500_s0 }
 0x113   :  { %v2635_v20 = vsel %vm122_vm2, %v177_v18, 0.0  ;;  %v2638_v21 = vsel %vm122_vm2, %v176_v19, 0.0 }
 0x114   :  { %v201_v22 = vrot.slane %v2635_v20, 2  ;;  %v200_v23 = vrot.slane %v2638_v21, 2  ;;  %v186_v28 = vrot.slane %v2635_v20, 1  ;;  %v185_v29 = vrot.slane %v2638_v21, 1 }
 0x115   :  { %v114_v24 = vpop.permute.xlu0 %113  ;;  %v112_v32 = vpop.permute.xlu1 %111 }
 0x116   :  { %v204_v25 = vsel %vm147_vm3, %v201_v22, %v203_v15  ;;  %v202_v26 = vsel %vm147_vm3, %v200_v23, %v201_v22  ;;  %v121_v30 = vsel %vm118_vm1, 0.0, %v114_v24  ;;  %v189_v34 = vsel %vm129_vm4, %v186_v28, %v188_v27 }
 0x117   :  { %209 = vrot.lane.b32.xlu0 %v204_v25, %s2500_s0  ;;  %207 = vrot.lane.b32.xlu1 %v202_v26, %s2500_s0  ;;  %v2653_v33 = vsel %vm122_vm2, %v121_v30, 0.0  ;;  %v187_v35 = vsel %vm129_vm4, %v185_v29, %v186_v28  ;;  %v120_v37 = vsel %vm118_vm1, 0.0, %v112_v32  ;;  %v254_v26 = vld [vmem:[#allocation2] sm:$0xff]  ;;  %v347_v28 = vlaneseq }
 0x118   :  { %v151_v38 = vrot.slane %v2653_v33, 2  ;;  %v2666_v40 = vsel %vm122_vm2, %v120_v37, 0.0  ;;  %v133_v41 = vrot.slane %v2653_v33, 1 }
 0x119   :  { %v110_v31 = vpop.permute.xlu0 %109  ;;  %v131_v43 = vrot.slane %v2666_v40, 1  ;;  %v149_v44 = vrot.slane %v2666_v40, 2  ;;  %v353_v30 = vand.u32 127, %v347_v28 }
 0x11a   :  { %v119_v36 = vsel %vm118_vm1, 0.0, %v110_v31 }
 0x11b   :  { %196 = vrot.lane.b32.xlu0 %v188_v27, %s2501_s26  ;;  %205 = vrot.lane.b32.xlu1 %v200_v23, %s2500_s0  ;;  %v2663_v39 = vsel %vm122_vm2, %v119_v36, 0.0  ;;  %v152_v45 = vsel %vm147_vm3, %v149_v44, %v151_v38  ;;  %v134_v46 = vsel %vm129_vm4, %v131_v43, %v133_v41  ;;  %v2738_v32 = vmul.u32 2, %v353_v30 }
 0x11c   :  { %v148_v42 = vrot.slane %v2663_v39, 2  ;;  %v130_v52 = vrot.slane %v2663_v39, 1  ;;  %vm584_vm2 = vcmask 121856  }
 0x11e   :  { %v150_v47 = vsel %vm147_vm3, %v148_v42, %v149_v44  ;;  %v132_v57 = vsel %vm129_vm4, %v130_v52, %v131_v43 }
 0x11f   :  { %194 = vrot.lane.b32.xlu0 %v189_v34, %s2501_s26  ;;  %192 = vrot.lane.b32.xlu1 %v187_v35, %s2501_s26  ;;  %v2505_v34 = vmov 1.0  }
 0x123   :  { %190 = vrot.lane.b32.xlu0 %v185_v29, %s2501_s26  ;;  %159 = vrot.lane.b32.xlu1 %v151_v38, %s2500_s0  ;;  %v2735_v29 = vshrl.u32 %v347_v28, 7  ;;  %v759_v28 = vld [vmem:[%s3263_s5] sm:$0xff] }
 0x125   :  { %v351_v31 = vadd.s32 24, %v2735_v29  ;;  %v2748_v35 = vadd.s32 8, %v2735_v29  ;;  %vm355_vm11 = vcmp.eq.s32.totalorder %v2735_v29, %v2738_v32 }
 0x127   :  { %153 = vrot.lane.b32.xlu0 %v148_v42, %s2500_s0  ;;  %141 = vrot.lane.b32.xlu1 %v133_v41, %s2501_s26  ;;  %vm358_vm8 = vcmp.eq.s32.totalorder %v351_v31, %v2738_v32  ;;  %vm356_vm10 = vcmp.eq.s32.totalorder %v2748_v35, %v2738_v32 }
 0x128   :  { %2098 = vmatpush3.msk.msra.mxu1 %vm358_vm8, %v2505_v34  ;;  %vm686_vm8 = vcmask 97280  }
 0x129   :  { %2099 = vmatprep.subr.mxu1 %v2502_v48 }
 0x12b   :  { %157 = vrot.lane.b32.xlu1 %v152_v45, %s2500_s0  ;;  %139 = vrot.lane.b32.xlu0 %v134_v46, %s2501_s26 }
 0x12f   :  { %155 = vrot.lane.b32.xlu1 %v150_v47, %s2500_s0 }
 0x184   :  { %v212_v49 = vpop.permute.xlu1 %211 }
 0x185   :  { %234 = vrot.lane.b32.xlu0 %v212_v49, %s2497_s16 }
 0x189   :  { %v210_v50 = vpop.permute.xlu0 %209  ;;  %v208_v51 = vpop.permute.xlu1 %207 }
 0x18a   :  { %232 = vrot.lane.b32.xlu0 %v210_v50, %s2497_s16 }
 0x18d   :  { %v197_v53 = vpop.permute.xlu0 %196  ;;  %v206_v54 = vpop.permute.xlu1 %205 }
 0x18e   :  { %230 = vrot.lane.b32.xlu0 %v208_v51, %s2497_s16  ;;  %v215_v55 = vsel %vm147_vm3, %v197_v53, %v206_v54  ;;  %v478_v53 = vld [vmem:[%s3261_s3] sm:$0xff] }
 0x18f   :  { %228 = vrot.lane.b32.xlu1 %v215_v55, %s2497_s16 }
 0x191   :  { %v195_v56 = vpop.permute.xlu0 %194  ;;  %v193_v59 = vpop.permute.xlu1 %192 }
 0x192   :  { %137 = vrot.lane.b32.xlu0 %v132_v57, %s2501_s26  ;;  %v480_v57 = vld [vmem:[%s3262_s4] sm:$0xff] }
 0x193   :  { %226 = vrot.lane.b32.xlu1 %v195_v56, %s2497_s16  ;;  %v481_v56 = vld [vmem:[%s3262_s4 + $0x8] sm:$0xff]  ;;  %s2509_s4 = smov 12  }
 0x195   :  { %v191_v60 = vpop.permute.xlu0 %190  ;;  %v160_v63 = vpop.permute.xlu1 %159 }
 0x196   :  { %135 = vrot.lane.b32.xlu0 %v130_v52, %s2501_s26  ;;  %v214_v61 = vsel %vm129_vm4, %v2628_v14, %v191_v60 }
 0x197   :  { %224 = vrot.lane.b32.xlu1 %v193_v59, %s2497_s16 }
 0x199   :  { %v154_v0 = vpop.permute.xlu0 %153  ;;  %v142_v1 = vpop.permute.xlu1 %141 }
 0x19a   :  { %220 = vrot.lane.b32.xlu0 %v2635_v20, %s2497_s16  ;;  %v166_v10 = vsel %vm147_vm3, %v142_v1, %v154_v0 }
 0x19b   :  { %222 = vrot.lane.b32.xlu1 %v214_v61, %s2497_s16 }
 0x19d   :  { %v140_v2 = vpop.permute.xlu0 %139  ;;  %v158_v3 = vpop.permute.xlu1 %157 }
 0x19e   :  { %258 = vperm.xlu0 %2342, %v255_v62  }
 0x19f   :  { %218 = vrot.lane.b32.xlu1 %v2638_v21, %s2497_s16 }
 0x1a1   :  { %v156_v7 = vpop.permute.xlu1 %155 }
 0x1f7   :  { %v235_v4 = vpop.permute.xlu0 %234 }
 0x1f8   :  { %v253_v5 = vsel %vm102_vm0, %v160_v63, %v235_v4 }
 0x1f9   :  { %2077 = vmatpush3.msk.msra.mxu0 %vm265_vm6, %v253_v5 }
 0x1fa   :  { %2078 = vmatprep.subr.mxu0 %v2502_v48 }
 0x1fc   :  { %v233_v6 = vpop.permute.xlu0 %232 }
 0x1fd   :  { %v252_v8 = vsel %vm102_vm0, %v158_v3, %v233_v6 }
 0x1fe   :  { %2079 = vmatpush3.msra.mxu0 %v252_v8 }
 0x1ff   :  { %2080 = vmatprep.subr.mxu0 %v2502_v48 }
 0x200   :  { %v231_v9 = vpop.permute.xlu0 %230 }
 0x201   :  { %v229_v11 = vpop.permute.xlu1 %228  ;;  %v251_v12 = vsel %vm102_vm0, %v156_v7, %v231_v9 }
 0x202   :  { %2081 = vmatpush3.msra.mxu0 %v251_v12  ;;  %v250_v13 = vsel %vm102_vm0, %v166_v10, %v229_v11 }
 0x203   :  { %2082 = vmatprep.subr.mxu0 %v2502_v48 }
 0x204   :  { %v138_v14 = vpop.permute.xlu0 %137  ;;  %2083 = vmatpush3.msra.mxu0 %v250_v13 }
 0x205   :  { %v227_v15 = vpop.permute.xlu1 %226  ;;  %2084 = vmatprep.subr.mxu0 %v2502_v48 }
 0x206   :  { %v249_v16 = vsel %vm102_vm0, %v140_v2, %v227_v15  ;;  %v479_v2 = vld [vmem:[%s3261_s3 + $0x8] sm:$0xff]  ;;  %s2508_s3 = smov 124  }
 0x207   :  { %2085 = vmatpush3.msra.mxu0 %v249_v16 }
 0x208   :  { %v136_v17 = vpop.permute.xlu0 %135  ;;  %2086 = vmatprep.subr.mxu0 %v2502_v48 }
 0x209   :  { %v225_v18 = vpop.permute.xlu1 %224  ;;  %v165_v20 = vsel %vm129_vm4, %v2653_v33, %v136_v17  ;;  %v350_v33 = vadd.s32 16, %v2735_v29  ;;  %v2851_v29 = vld [vmem:[%s3264_s6] sm:$0xff] }
 0x20a   :  { %v248_v19 = vsel %vm102_vm0, %v138_v14, %v225_v18 }
 0x20b   :  { %2087 = vmatpush3.msra.mxu0 %v248_v19  ;;  %vm357_vm9 = vcmp.eq.s32.totalorder %v350_v33, %v2738_v32 }
 0x20c   :  { %2088 = vmatprep.subr.mxu0 %v2502_v48  ;;  %v221_v21 = vpop.permute.xlu0 %220  ;;  %2100 = vmatpush3.msk.msra.mxu1 %vm357_vm9, %v2505_v34  ;;  %vm748_vm9 = vcmask 1040384  }
 0x20d   :  { %v223_v22 = vpop.permute.xlu1 %222  ;;  %v246_v24 = vsel %vm102_vm0, %v2666_v40, %v221_v21  ;;  %2101 = vmatprep.subr.mxu1 %v2502_v48 }
 0x20e   :  { %v247_v23 = vsel %vm102_vm0, %v165_v20, %v223_v22  ;;  %2102 = vmatpush3.msk.msra.mxu1 %vm356_vm10, %v2505_v34 }
 0x20f   :  { %2089 = vmatpush3.msra.mxu0 %v247_v23  ;;  %2103 = vmatprep.subr.mxu1 %v2502_v48  ;;  %v2825_v23 = vld [vmem:[%s3264_s6 + $0x18] sm:$0xff] }
 0x210   :  { %2090 = vmatprep.subr.mxu0 %v2502_v48  ;;  %2104 = vmatpush3.msk.msra.mxu1 %vm355_vm11, %v2505_v34 }
 0x211   :  { %2091 = vmatpush3.msra.mxu0 %v246_v24  ;;  %v219_v25 = vpop.permute.xlu1 %218 }
 0x212   :  { %2092 = vmatprep.subr.mxu0 %v2502_v48  ;;  %v245_v27 = vsel %vm102_vm0, %v2663_v39, %v219_v25  ;;  %v2832_v25 = vld [vmem:[%s3264_s6 + $0x10] sm:$0xff] }
 0x213   :  { %2093 = vmatpush3.msra.mxu0 %v245_v27  ;;  %v2842_v27 = vld [vmem:[%s3264_s6 + $0x8] sm:$0xff] }
 0x214   :  { %2095 = vmatmul.mubr.msk.f32.vlgmr.msra.gmra.mxu0 %vm261_vm7, %v254_v26  ;;  %2124 = vmatprep.subr.mxu0 %v2502_v48  ;;  %v760_v26 = vld [vmem:[%s3263_s5 + $0x8] sm:$0xff]  ;;  %vm683_vm7 = vcmask 31744   ;;  %s2511_s5 = smov 32  }
 0x215   :  { %2128 = vmatprep.mubr.msk.f32.mxu0 %vm2503_vm5, %v2502_v48  ;;  %2125 = vmatpush3.msra.mxu0 %v760_v26  ;;  %v2907_v26 = vld [vmem:[%s3266_s8 + $0x30] sm:$0xff] }
 0x216   :  { %2126 = vmatprep.subr.mxu0 %v2502_v48 }
 0x217   :  { %2127 = vmatpush3.msra.mxu0 %v759_v28  ;;  %v2914_v28 = vld [vmem:[%s3266_s8 + $0x28] sm:$0xff] }
 0x218   :  { %2142 = vmatprep.subr.mxu0 %v2502_v48 }
 0x219   :  { %v259_v36 = vpop.permute.xlu0 %258 }
 0x2d4   :  { %v335_v37 = vpop.f32.mrf.mxu0 }
 0x2d5   :  { %v336_v38 = vadd.f32 %v335_v37, %v259_v36 }
 0x2d6   :  { %v2096_v39 = vpop.f32.mrf.mxu0 }
 0x2d7   :  { %v339_v40 = vmax.f32 %v336_v38, 0.0 }
 0x2d9   :  { %341 = vrot.lane.b32.xlu1 %v339_v40, %s2501_s26 }
 0x34b   :  { %v342_v41 = vpop.permute.xlu1 %341 }
 0x34c   :  { %v345_v42 = vsel %vm344_vm12, %v342_v41, 0.0  ;;  %vm754_vm12 = vcmask 1043456  }
 0x34d   :  { %v346_v43 = vmax.f32 %v339_v40, %v345_v42 }
 0x34f   :  { %2106 = vmatmul.mubr.msk.f32.vlgmr.msra.gmra.mxu1 %vm367_vm13, %v346_v43 }
 0x350   :  { %2114 = vmatprep.mubr.msk.f32.mxu1 %vm492_vm15, %v478_v53 }
 0x40f   :  { %v437_v44 = vpop.f32.mrf.mxu1 }
 0x410   :  { %442 = vrot.lane.b32.xlu0 %v437_v44, %s2499_s25  ;;  %455 = vrot.lane.b32.xlu1 %v437_v44, %s2506_s2 }
 0x411   :  { %v2107_v45 = vpop.f32.mrf.mxu1 }
 0x482   :  { %v443_v46 = vpop.permute.xlu0 %442  ;;  %v456_v47 = vpop.permute.xlu1 %455 }
 0x483   :  { %v458_v49 = vsel %vm118_vm1, 0.0, %v456_v47  ;;  %v445_v51 = vsel %vm118_vm1, 0.0, %v443_v46  ;;  %vm474_vm1 = vcmask 64512  }
 0x484   :  { %v459_v50 = vsel %vm446_vm14, %v458_v49, 0.0  ;;  %v447_v52 = vsel %vm446_vm14, %v445_v51, 0.0 }
 0x485   :  { %461 = vrot.lane.b32.xlu0 %v459_v50, %s2501_s26  ;;  %463 = vrot.lane.b32.xlu1 %v459_v50, %s2500_s0 }
 0x489   :  { %452 = vrot.lane.b32.xlu1 %v447_v52, %s2500_s0 }
 0x48d   :  { %449 = vrot.lane.b32.xlu1 %v447_v52, %s2501_s26 }
 0x491   :  { %465 = vrot.lane.b32.xlu1 %v459_v50, %s2507_s28 }
 0x495   :  { %489 = vperm.xlu1 %2343, %v481_v56  }
 0x4f7   :  { %v464_v54 = vpop.permute.xlu1 %463  ;;  %v462_v55 = vpop.permute.xlu0 %461 }
 0x4f8   :  { %469 = vrot.lane.b32.xlu0 %v464_v54, %s2507_s28 }
 0x4fb   :  { %v453_v58 = vpop.permute.xlu1 %452 }
 0x4fc   :  { %467 = vrot.lane.b32.xlu0 %v462_v55, %s2507_s28 }
 0x4ff   :  { %v450_v59 = vpop.permute.xlu1 %449 }
 0x500   :  { %484 = vperm.xlu0 %2342, %v480_v57  }
 0x503   :  { %v466_v62 = vpop.permute.xlu1 %465 }
 0x504   :  { %v475_v1 = vsel %vm474_vm1, %v447_v52, %v466_v62 }
 0x510   :  { %v490_v3 = vpop.permute.xlu1 %489 }
 0x56a   :  { %v470_v60 = vpop.permute.xlu0 %469 }
 0x56b   :  { %v477_v61 = vsel %vm474_vm1, %v453_v58, %v470_v60 }
 0x56c   :  { %2108 = vmatprep.subr.mxu1 %v477_v61 }
 0x56d   :  { %2109 = vmatpush3.msra.mxu1 %v477_v61 }
 0x56e   :  { %v468_v63 = vpop.permute.xlu0 %467 }
 0x56f   :  { %v476_v0 = vsel %vm474_vm1, %v450_v59, %v468_v63 }
 0x570   :  { %2110 = vmatprep.subr.mxu1 %v476_v0 }
 0x571   :  { %2111 = vmatpush3.msra.mxu1 %v476_v0 }
 0x572   :  { %2112 = vmatprep.subr.mxu1 %v475_v1 }
 0x573   :  { %2113 = vmatpush3.msra.mxu1 %v475_v1 }
 0x574   :  { %2115 = vmatmul.mubr.msk.f32.vlgmr.msra.gmra.mxu1 %vm492_vm15, %v479_v2  ;;  %2117 = vmatprep.subr.msk.mxu1 %vm356_vm10, %v2505_v34 }
 0x575   :  { %2118 = vmatpush3.msk.msra.mxu1 %vm356_vm10, %v2505_v34  ;;  %vm750_vm10 = vcmask 1041408  }
 0x576   :  { %2119 = vmatprep.subr.msk.mxu1 %vm355_vm11, %v2505_v34 }
 0x577   :  { %2120 = vmatpush3.msk.msra.mxu1 %vm355_vm11, %v2505_v34  ;;  %vm752_vm11 = vcmask 1042432  }
 0x578   :  { %2131 = vmatprep.subr.mxu1 %v2502_v48 }
 0x57b   :  { %v485_v6 = vpop.permute.xlu0 %484 }
 0x634   :  { %v2116_v4 = vpop.f32.mrf.mxu1 }
 0x635   :  { %v571_v5 = vadd.f32 %v2116_v4, %v490_v3 }
 0x636   :  { %v565_v7 = vpop.f32.mrf.mxu1 }
 0x637   :  { %v575_v8 = vmax.f32 %v571_v5, 0.0  ;;  %v566_v9 = vadd.f32 %v565_v7, %v485_v6 }
 0x639   :  { %v574_v10 = vmax.f32 %v566_v9, 0.0  ;;  %580 = vrot.lane.b32.xlu1 %v575_v8, %s2501_s26 }
 0x63b   :  { %578 = vrot.lane.b32.xlu0 %v574_v10, %s2501_s26 }
 0x6ab   :  { %v581_v11 = vpop.permute.xlu1 %580 }
 0x6ac   :  { %v586_v12 = vsel %vm584_vm2, %v581_v11, 0.0 }
 0x6ad   :  { %v579_v13 = vpop.permute.xlu0 %578  ;;  %v588_v16 = vmax.f32 %v575_v8, %v586_v12  ;;  %v1939_v8 = vld [vmem:[#allocation5] ss:$0 sm:$0xff] }
 0x6ae   :  { %v585_v14 = vsel %vm584_vm2, %v579_v13, 0.0 }
 0x6af   :  { %v587_v15 = vmax.f32 %v574_v10, %v585_v14 }
 0x6b1   :  { %2121 = vmatprep.mubr.msk.f32.mxu1 %vm102_vm0, %v587_v15 }
 0x6b2   :  { %2122 = vmatmul.mubr.msk.f32.vlgmr.msra.gmra.mxu1 %vm102_vm0, %v588_v16 }
 0x6b3   :  { %2139 = vmatprep.mubr.msk.f32.mxu1 %vm2503_vm5, %v2502_v48  ;;  %2132 = vmatpush3.msra.mxu1 %v2825_v23 }
 0x6b4   :  { %2133 = vmatprep.subr.mxu1 %v2502_v48 }
 0x6b5   :  { %2134 = vmatpush3.msra.mxu1 %v2832_v25 }
 0x6b6   :  { %2135 = vmatprep.subr.mxu1 %v2502_v48 }
 0x6b7   :  { %2136 = vmatpush3.msra.mxu1 %v2842_v27 }
 0x6b8   :  { %2137 = vmatprep.subr.mxu1 %v2502_v48 }
 0x6b9   :  { %2138 = vmatpush3.msra.mxu1 %v2851_v29 }
 0x6ba   :  { %2140 = vmatmul.mubr.f32.vlgmr.msra.gmra.mxu1 %v2502_v48  ;;  %2153 = vmatprep.subr.mxu1 %v2502_v48 }
 0x6bb   :  { %2169 = vmatprep.mubr.msk.f32.mxu1 %vm2503_vm5, %v2502_v48 }
 0x772   :  { %v2815_v17 = vpop.f32.mrf.mxu1 }
 0x773   :  { %717 = vrot.lane.b32.xlu0 %v2815_v17, %s2508_s3  ;;  %v706_v18 = vrot.slane %v2815_v17, 2  ;;  %v710_v20 = vrot.slane %v2815_v17, 3  ;;  %v702_v21 = vrot.slane %v2815_v17, 1 }
 0x774   :  { %v661_v19 = vpop.f32.mrf.mxu1 }
 0x775   :  { %707 = vrot.lane.b32.xlu1 %v706_v18, %s2507_s28  ;;  %v671_v22 = vrot.slane %v661_v19, 1  ;;  %v675_v24 = vrot.slane %v661_v19, 2  ;;  %v679_v30 = vrot.slane %v661_v19, 3 }
 0x777   :  { %688 = vrot.lane.b32.xlu0 %v661_v19, %s2508_s3  ;;  %s1909_s3 = sshll.u32 %s2514_s9, 4  ;;  %s1910_s3 = int_to_ptr.vmem [resolvable:$true] %s1909_s3 }
 0x778   :  { %p2473_p2 = scmp.lt.s32.totalorder %s1910_s3, %s1910_s3 }
 0x779   :  { %711 = vrot.lane.b32.xlu1 %v710_v20, %s2509_s4 }
 0x77a   :  { %v923_v6 = vpop.f32.mrf.mxu1 }
 0x77b   :  { %703 = vrot.lane.b32.xlu0 %v702_v21, %s2510_s19 }
 0x77c   :  { %v2141_v7 = vpop.f32.mrf.mxu1 }
 0x77d   :  { %672 = vrot.lane.b32.xlu1 %v671_v22, %s2510_s19 }
 0x77f   :  { %692 = vrot.lane.b32.xlu0 %v675_v24, %s2510_s19 }
 0x781   :  { %676 = vrot.lane.b32.xlu1 %v675_v24, %s2507_s28  ;;  %v2902_v24 = vld [vmem:[%s3266_s8 + $0x38] sm:$0xff] }
 0x782   :  { %2154 = vmatpush3.msra.mxu1 %v2902_v24 }
 0x783   :  { %695 = vrot.lane.b32.xlu0 %v679_v30, %s2507_s28  ;;  %2155 = vmatprep.subr.mxu1 %v2502_v48 }
 0x784   :  { %2156 = vmatpush3.msra.mxu1 %v2907_v26 }
 0x785   :  { %680 = vrot.lane.b32.xlu1 %v679_v30, %s2509_s4  ;;  %2157 = vmatprep.subr.mxu1 %v2502_v48  ;;  %v2921_v30 = vld [vmem:[%s3266_s8 + $0x20] sm:$0xff] }
 0x786   :  { %2158 = vmatpush3.msra.mxu1 %v2914_v28 }
 0x787   :  { %721 = vrot.lane.b32.xlu0 %v706_v18, %s2510_s19  ;;  %2159 = vmatprep.subr.mxu1 %v2502_v48 }
 0x788   :  { %2160 = vmatpush3.msra.mxu1 %v2921_v30 }
 0x789   :  { %724 = vrot.lane.b32.xlu1 %v710_v20, %s2507_s28  ;;  %2161 = vmatprep.subr.mxu1 %v2502_v48 }
 0x7e5   :  { %v718_v31 = vpop.permute.xlu0 %717 }
 0x7e6   :  { %v727_v52 = vsel %vm683_vm7, %v718_v31, %v702_v21  ;;  %v2928_v31 = vld [vmem:[%s3266_s8 + $0x18] sm:$0xff] }
 0x7e7   :  { %v708_v32 = vpop.permute.xlu1 %707  ;;  %2162 = vmatpush3.msra.mxu1 %v2928_v31 }
 0x7e8   :  { %2163 = vmatprep.subr.mxu1 %v2502_v48 }
 0x7e9   :  { %v689_v33 = vpop.permute.xlu0 %688 }
 0x7ea   :  { %v698_v40 = vsel %vm683_vm7, %v689_v33, %v671_v22 }
 0x7eb   :  { %v712_v34 = vpop.permute.xlu1 %711 }
 0x7ed   :  { %v704_v35 = vpop.permute.xlu0 %703 }
 0x7ee   :  { %v714_v38 = vsel %vm683_vm7, %v2815_v17, %v704_v35  ;;  %v2952_v35 = vld [vmem:[%s3266_s8] sm:$0xff] }
 0x7ef   :  { %v673_v36 = vpop.permute.xlu1 %672  ;;  %v715_v41 = vsel %vm474_vm1, %v714_v38, %v708_v32  ;;  %v2935_v32 = vld [vmem:[%s3266_s8 + $0x10] sm:$0xff] }
 0x7f0   :  { %v684_v44 = vsel %vm683_vm7, %v661_v19, %v673_v36  ;;  %v716_v50 = vsel %vm686_vm8, %v715_v41, %v712_v34  ;;  %v2942_v34 = vld [vmem:[%s3266_s8 + $0x8] sm:$0xff]  ;;  %2164 = vmatpush3.msra.mxu1 %v2935_v32  ;;  %s2513_s8 = smov 96  }
 0x7f1   :  { %v693_v37 = vpop.permute.xlu0 %692  ;;  %v739_v58 = vrot.slane %v716_v50, 4  ;;  %v744_v1 = vrot.slane %v716_v50, 6  ;;  %2165 = vmatprep.subr.mxu1 %v2502_v48 }
 0x7f2   :  { %v699_v42 = vsel %vm474_vm1, %v698_v40, %v693_v37  ;;  %2166 = vmatpush3.msra.mxu1 %v2942_v34 }
 0x7f3   :  { %v677_v39 = vpop.permute.xlu1 %676  ;;  %2167 = vmatprep.subr.mxu1 %v2502_v48 }
 0x7f4   :  { %v685_v46 = vsel %vm474_vm1, %v684_v44, %v677_v39  ;;  %2168 = vmatpush3.msra.mxu1 %v2952_v35 }
 0x7f5   :  { %v696_v43 = vpop.permute.xlu0 %695  ;;  %2202 = vmatprep.subr.mxu1 %v2502_v48 }
 0x7f6   :  { %v700_v45 = vsel %vm686_vm8, %v699_v42, %v696_v43 }
 0x7f7   :  { %v731_v47 = vrot.slane %v700_v45, 7  ;;  %v681_v49 = vpop.permute.xlu1 %680  ;;  %v736_v56 = vrot.slane %v700_v45, 1 }
 0x7f8   :  { %v687_v51 = vsel %vm686_vm8, %v685_v46, %v681_v49 }
 0x7f9   :  { %v734_v53 = vrot.slane %v687_v51, 2  ;;  %v749_v54 = vsel %vm748_vm9, %v687_v51, %v731_v47  ;;  %v722_v55 = vpop.permute.xlu0 %721 }
 0x7fa   :  { %v728_v57 = vsel %vm474_vm1, %v727_v52, %v722_v55 }
 0x7fb   :  { %v751_v59 = vsel %vm750_vm10, %v749_v54, %v734_v53  ;;  %v725_v60 = vpop.permute.xlu1 %724 }
 0x7fc   :  { %v753_v61 = vsel %vm752_vm11, %v751_v59, %v736_v56  ;;  %v729_v62 = vsel %vm686_vm8, %v728_v57, %v725_v60 }
 0x7fd   :  { %v742_v63 = vrot.slane %v729_v62, 3  ;;  %v755_v0 = vsel %vm754_vm12, %v753_v61, %v739_v58  ;;  %v746_v2 = vrot.slane %v729_v62, 5 }
 0x7ff   :  { %v756_v3 = vsel %vm265_vm6, %v755_v0, %v742_v63 }
 0x800   :  { %v757_v4 = vsel %vm147_vm3, %v756_v3, %v744_v1  ;;  %vm1712_vm3 = vcmask 785408  }
 0x801   :  { %v758_v5 = vsel %vm129_vm4, %v757_v4, %v746_v2  ;;  %vm1901_vm4 = vcmask 33792  }
 0x802   :  { %2129 = vmatmul.mubr.msk.f32.vlgmr.msra.gmra.mxu0 %vm102_vm0, %v758_v5  ;;  %vm1066_vm0 = vcmask 523264  }
 0x803   :  { %2143 = vmatpush3.msra.mxu0 %v2825_v23  ;;  %2150 = vmatprep.mubr.msk.f32.mxu0 %vm2503_vm5, %v2502_v48 }
 0x804   :  { %2144 = vmatprep.subr.mxu0 %v2502_v48 }
 0x805   :  { %2145 = vmatpush3.msra.mxu0 %v2832_v25 }
 0x806   :  { %2146 = vmatprep.subr.mxu0 %v2502_v48 }
 0x807   :  { %2147 = vmatpush3.msra.mxu0 %v2842_v27 }
 0x808   :  { %2148 = vmatprep.subr.mxu0 %v2502_v48 }
 0x809   :  { %2149 = vmatpush3.msra.mxu0 %v2851_v29 }
 0x80a   :  { %2172 = vmatprep.subr.mxu0 %v2502_v48 }
 0x8c2   :  { %v837_v9 = vpop.f32.mrf.mxu0 }
 0x8c3   :  { %v2891_v10 = vadd.f32 %v1939_v8, %v837_v9 }
 0x8c4   :  { %v2130_v11 = vpop.f32.mrf.mxu0 }
 0x8c5   :  { %v927_v12 = vadd.f32 %v923_v6, %v2891_v10 }
 0x8c7   :  { %2344 = vtanh.f32 %v927_v12  ;;  %v1941_v14 = vmul.f32 -1.442695, %v927_v12 }
 0x8c9   :  { %2346 = vpow2.f32 %v1941_v14 }
 0x8d4   :  { %v2345_v13 = vpop.eup %2344 }
 0x8d5   :  { %937 = vrot.lane.b32.xlu0 %v2345_v13, %s2511_s5 }
 0x8d6   :  { %v2347_v15 = vpop.eup %2346 }
 0x8d7   :  { %v931_v16 = vadd.f32 1.0, %v2347_v15 }
 0x8d9   :  { %2348 = vrcp.f32 %v931_v16 }
 0x8e6   :  { %v2349_v17 = vpop.eup %2348 }
 0x8e7   :  { %v935_v20 = vmul.f32 0.0, %v2349_v17 }
 0x947   :  { %v938_v18 = vpop.permute.xlu0 %937 }
 0x948   :  { %v940_v19 = vmul.f32 %v2349_v17, %v938_v18 }
 0x94a   :  { %942 = vrot.lane.b32.xlu1 %v940_v19, %s2511_s5 }
 0x9bc   :  { %v943_v21 = vpop.permute.xlu1 %942 }
 0x9bd   :  { %v2896_v22 = vadd.f32 %v943_v21, %v935_v20 }
 0x9bf   :  { %2350 = vtanh.f32 %v2896_v22  ;;  %v1039_v59 = vrot.slane %v2896_v22, 6 }
 0x9cc   :  { %v2351_v33 = vpop.eup %2350 }
 0x9cd   :  { %948 = vrot.lane.b32.xlu0 %v2351_v33, %s2511_s5 }
 0xa3f   :  { %v949_v36 = vpop.permute.xlu0 %948 }
 0xa40   :  { %v951_v37 = vmul.f32 %v2349_v17, %v949_v36 }
 0xa42   :  { %953 = vrot.lane.b32.xlu1 %v951_v37, %s2512_s24 }
 0xab4   :  { %v954_v38 = vpop.permute.xlu1 %953 }
 0xab5   :  { %v1059_v39 = vsel %vm367_vm13, %v954_v38, 0.0  ;;  %2151 = vmatmul.mubr.msk.f32.vlgmr.msra.gmra.mxu0 %vm367_vm13, %v954_v38 }
 0xab6   :  { %2170 = vmatmul.mubr.msk.f32.vlgmr.msra.gmra.mxu1 %vm1066_vm0, %v1059_v39  ;;  %2173 = vmatpush3.msra.mxu0 %v2825_v23 }
 0xab7   :  { %2174 = vmatprep.subr.mxu0 %v2502_v48  ;;  %2180 = vmatprep.mubr.msk.f32.mxu0 %vm2503_vm5, %v2502_v48 }
 0xab8   :  { %2175 = vmatpush3.msra.mxu0 %v2832_v25  ;;  %2203 = vmatpush3.msra.mxu1 %v2825_v23  ;;  %v2980_v23 = vld [vmem:[#allocation7] ss:$0 sm:$0xff] }
 0xab9   :  { %2176 = vmatprep.subr.mxu0 %v2502_v48  ;;  %2204 = vmatprep.subr.mxu1 %v2502_v48 }
 0xaba   :  { %2177 = vmatpush3.msra.mxu0 %v2842_v27  ;;  %2205 = vmatpush3.msra.mxu1 %v2832_v25 }
 0xabb   :  { %2178 = vmatprep.subr.mxu0 %v2502_v48  ;;  %2206 = vmatprep.subr.mxu1 %v2502_v48 }
 0xabc   :  { %2179 = vmatpush3.msra.mxu0 %v2851_v29  ;;  %2207 = vmatpush3.msra.mxu1 %v2842_v27 }
 0xabd   :  { %2183 = vmatprep.subr.mxu0 %v2502_v48  ;;  %2208 = vmatprep.subr.mxu1 %v2502_v48 }
 0xabe   :  { %2209 = vmatpush3.msra.mxu1 %v2851_v29  ;;  %2210 = vmatprep.mubr.msk.f32.mxu1 %vm2503_vm5, %v2502_v48 }
 0xabf   :  { %2213 = vmatprep.subr.mxu1 %v2502_v48 }
 0xb75   :  { %v1023_v25 = vpop.f32.mrf.mxu0 }
 0xb76   :  { %v1028_v40 = vrot.slane %v1023_v25, 6  ;;  %v1136_v41 = vpop.f32.mrf.mxu1 }
 0xb77   :  { %v1137_v42 = vadd.f32 %v2980_v23, %v1136_v41  ;;  %v2152_v43 = vpop.f32.mrf.mxu0 }
 0xb78   :  { %v1030_v27 = vadd.f32 %v1028_v40, %v2891_v10  ;;  %v2171_v44 = vpop.f32.mrf.mxu1 }
 0xb79   :  { %2352 = vtanh.f32 %v1137_v42  ;;  %v1946_v46 = vmul.f32 -1.442695, %v1137_v42 }
 0xb7a   :  { %2354 = vtanh.f32 %v1030_v27  ;;  %v1943_v47 = vmul.f32 -1.442695, %v1030_v27 }
 0xb7b   :  { %2356 = vpow2.f32 %v1946_v46 }
 0xb7c   :  { %2358 = vpow2.f32 %v1943_v47 }
 0xb86   :  { %v2353_v45 = vpop.eup %2352 }
 0xb87   :  { %v2355_v29 = vpop.eup %2354  ;;  %1149 = vrot.lane.b32.xlu1 %v2353_v45, %s2511_s5 }
 0xb88   :  { %1043 = vrot.lane.b32.xlu0 %v2355_v29, %s2511_s5  ;;  %v2357_v49 = vpop.eup %2356 }
 0xb89   :  { %v2359_v50 = vpop.eup %2358  ;;  %v1143_v51 = vadd.f32 1.0, %v2357_v49 }
 0xb8a   :  { %v1034_v52 = vadd.f32 1.0, %v2359_v50 }
 0xb8b   :  { %2360 = vrcp.f32 %v1143_v51 }
 0xb8c   :  { %2362 = vrcp.f32 %v1034_v52 }
 0xb98   :  { %v2361_v53 = vpop.eup %2360 }
 0xb99   :  { %v2363_v55 = vpop.eup %2362  ;;  %v1147_v60 = vmul.f32 0.0, %v2361_v53 }
 0xb9a   :  { %v1041_v62 = vmul.f32 %v2363_v55, %v1039_v59 }
 0xbf9   :  { %v1150_v54 = vpop.permute.xlu1 %1149 }
 0xbfa   :  { %v1152_v56 = vmul.f32 %v2361_v53, %v1150_v54  ;;  %v1044_v57 = vpop.permute.xlu0 %1043 }
 0xbfb   :  { %v1046_v58 = vmul.f32 %v2363_v55, %v1044_v57 }
 0xbfc   :  { %1154 = vrot.lane.b32.xlu1 %v1152_v56, %s2511_s5 }
 0xbfd   :  { %1048 = vrot.lane.b32.xlu0 %v1046_v58, %s2511_s5 }
 0xc6e   :  { %v1155_v61 = vpop.permute.xlu1 %1154 }
 0xc6f   :  { %v2989_v63 = vadd.f32 %v1155_v61, %v1147_v60  ;;  %v1049_v0 = vpop.permute.xlu0 %1048 }
 0xc70   :  { %v2991_v1 = vadd.f32 %v1049_v0, %v1041_v62 }
 0xc71   :  { %2364 = vtanh.f32 %v2989_v63 }
 0xc72   :  { %2366 = vtanh.f32 %v2991_v1  ;;  %v1252_v46 = vrot.slane %v2991_v1, 6 }
 0xc7e   :  { %v2365_v2 = vpop.eup %2364 }
 0xc7f   :  { %v2367_v3 = vpop.eup %2366  ;;  %1160 = vrot.lane.b32.xlu1 %v2365_v2, %s2511_s5 }
 0xc80   :  { %1054 = vrot.lane.b32.xlu0 %v2367_v3, %s2511_s5 }
 0xcf1   :  { %v1161_v4 = vpop.permute.xlu1 %1160 }
 0xcf2   :  { %v1055_v5 = vpop.permute.xlu0 %1054  ;;  %v2997_v7 = vmul.f32 %v2361_v53, %v1161_v4 }
 0xcf3   :  { %v1057_v6 = vmul.f32 %v2363_v55, %v1055_v5 }
 0xcf4   :  { %v1275_v9 = vrot.slane %v2997_v7, 6 }
 0xcf5   :  { %v1165_v8 = vrot.slane %v1057_v6, 2  ;;  %1271 = vrot.lane.b32.xlu1 %v1057_v6, %s2512_s24 }
 0xcf7   :  { %1166 = vrot.lane.b32.xlu0 %v1165_v8, %s2512_s24 }
 0xcfb   :  { %1276 = vrot.lane.b32.xlu0 %v1275_v9, %s2513_s8 }
 0xd67   :  { %v1272_v13 = vpop.permute.xlu1 %1271 }
 0xd69   :  { %v1167_v11 = vpop.permute.xlu0 %1166 }
 0xd6a   :  { %2181 = vmatmul.mubr.msk.f32.vlgmr.msra.gmra.mxu0 %vm367_vm13, %v1167_v11 }
 0xd6b   :  { %2184 = vmatpush3.msra.mxu0 %v2902_v24  ;;  %2199 = vmatprep.mubr.msk.f32.mxu0 %vm2503_vm5, %v2502_v48 }
 0xd6c   :  { %2185 = vmatprep.subr.mxu0 %v2502_v48 }
 0xd6d   :  { %2186 = vmatpush3.msra.mxu0 %v2907_v26  ;;  %v1277_v12 = vpop.permute.xlu0 %1276 }
 0xd6e   :  { %2187 = vmatprep.subr.mxu0 %v2502_v48  ;;  %v1279_v14 = vsel %vm367_vm13, %v1272_v13, %v1277_v12 }
 0xd6f   :  { %2188 = vmatpush3.msra.mxu0 %v2914_v28  ;;  %v1281_v15 = vrot.slane %v1279_v14, 2 }
 0xd70   :  { %2189 = vmatprep.subr.mxu0 %v2502_v48 }
 0xd71   :  { %2190 = vmatpush3.msra.mxu0 %v2921_v30 }
 0xd72   :  { %2191 = vmatprep.subr.mxu0 %v2502_v48 }
 0xd73   :  { %2192 = vmatpush3.msra.mxu0 %v2928_v31 }
 0xd74   :  { %2193 = vmatprep.subr.mxu0 %v2502_v48 }
 0xd75   :  { %2194 = vmatpush3.msra.mxu0 %v2935_v32 }
 0xd76   :  { %2195 = vmatprep.subr.mxu0 %v2502_v48 }
 0xd77   :  { %2196 = vmatpush3.msra.mxu0 %v2942_v34 }
 0xd78   :  { %2197 = vmatprep.subr.mxu0 %v2502_v48 }
 0xd79   :  { %2198 = vmatpush3.msra.mxu0 %v2952_v35 }
 0xd7a   :  { %2200 = vmatmul.mubr.msk.f32.vlgmr.msra.gmra.mxu0 %vm1066_vm0, %v1281_v15  ;;  %2232 = vmatprep.subr.mxu0 %v2502_v48 }
 0xd7b   :  { %2233 = vmatpush3.msra.mxu0 %v2902_v24  ;;  %2248 = vmatprep.mubr.msk.f32.mxu0 %vm2503_vm5, %v2502_v48 }
 0xd7c   :  { %2234 = vmatprep.subr.mxu0 %v2502_v48 }
 0xd7d   :  { %2235 = vmatpush3.msra.mxu0 %v2907_v26 }
 0xd7e   :  { %2236 = vmatprep.subr.mxu0 %v2502_v48 }
 0xd7f   :  { %2237 = vmatpush3.msra.mxu0 %v2914_v28 }
 0xd80   :  { %2238 = vmatprep.subr.mxu0 %v2502_v48 }
 0xd81   :  { %2239 = vmatpush3.msra.mxu0 %v2921_v30 }
 0xd82   :  { %2240 = vmatprep.subr.mxu0 %v2502_v48 }
 0xd83   :  { %2241 = vmatpush3.msra.mxu0 %v2928_v31 }
 0xd84   :  { %2242 = vmatprep.subr.mxu0 %v2502_v48 }
 0xd85   :  { %2243 = vmatpush3.msra.mxu0 %v2935_v32 }
 0xd86   :  { %2244 = vmatprep.subr.mxu0 %v2502_v48 }
 0xd87   :  { %2245 = vmatpush3.msra.mxu0 %v2942_v34 }
 0xd88   :  { %2246 = vmatprep.subr.mxu0 %v2502_v48 }
 0xd89   :  { %2247 = vmatpush3.msra.mxu0 %v2952_v35 }
 0xd8a   :  { %2286 = vmatprep.subr.mxu0 %v2502_v48 }
 0xe2a   :  { %v1236_v16 = vpop.f32.mrf.mxu0 }
 0xe2b   :  { %v1241_v17 = vrot.slane %v1236_v16, 4 }
 0xe2c   :  { %v2182_v18 = vpop.f32.mrf.mxu0 }
 0xe2d   :  { %v1243_v19 = vadd.f32 %v1241_v17, %v2891_v10 }
 0xe2f   :  { %2368 = vtanh.f32 %v1243_v19  ;;  %v1948_v37 = vmul.f32 -1.442695, %v1243_v19 }
 0xe3a   :  { %v1350_v20 = vpop.f32.mrf.mxu0 }
 0xe3b   :  { %v1351_v21 = vadd.f32 %v2980_v23, %v1350_v20 }
 0xe3c   :  { %v2369_v22 = vpop.eup %2368  ;;  %v2201_v33 = vpop.f32.mrf.mxu0 }
 0xe3d   :  { %2370 = vtanh.f32 %v1351_v21  ;;  %1256 = vrot.lane.b32.xlu1 %v2369_v22, %s2511_s5  ;;  %v1950_v38 = vmul.f32 -1.442695, %v1351_v21 }
 0xe3e   :  { %2372 = vpow2.f32 %v1948_v37 }
 0xe3f   :  { %2374 = vpow2.f32 %v1950_v38 }
 0xe4a   :  { %v2371_v36 = vpop.eup %2370 }
 0xe4b   :  { %1363 = vrot.lane.b32.xlu0 %v2371_v36, %s2511_s5  ;;  %v2373_v39 = vpop.eup %2372 }
 0xe4c   :  { %v1247_v25 = vadd.f32 1.0, %v2373_v39  ;;  %v2375_v40 = vpop.eup %2374 }
 0xe4d   :  { %v1357_v41 = vadd.f32 1.0, %v2375_v40 }
 0xe4e   :  { %2376 = vrcp.f32 %v1247_v25 }
 0xe4f   :  { %2378 = vrcp.f32 %v1357_v41 }
 0xe5b   :  { %v2377_v42 = vpop.eup %2376 }
 0xe5c   :  { %v2379_v44 = vpop.eup %2378  ;;  %v1254_v47 = vmul.f32 %v2377_v42, %v1252_v46 }
 0xe5d   :  { %v1361_v51 = vmul.f32 %v2379_v44, %v2989_v63 }
 0xeaf   :  { %v1257_v43 = vpop.permute.xlu1 %1256 }
 0xeb0   :  { %v1259_v27 = vmul.f32 %v2377_v42, %v1257_v43 }
 0xeb2   :  { %1261 = vrot.lane.b32.xlu1 %v1259_v27, %s2511_s5 }
 0xebd   :  { %v1364_v45 = vpop.permute.xlu0 %1363 }
 0xebe   :  { %v1366_v29 = vmul.f32 %v2379_v44, %v1364_v45 }
 0xec0   :  { %1368 = vrot.lane.b32.xlu0 %v1366_v29, %s2511_s5 }
 0xf24   :  { %v1262_v49 = vpop.permute.xlu1 %1261 }
 0xf25   :  { %v3049_v50 = vadd.f32 %v1262_v49, %v1254_v47 }
 0xf27   :  { %2380 = vtanh.f32 %v3049_v50  ;;  %v1466_v17 = vrot.slane %v3049_v50, 6 }
 0xf32   :  { %v1369_v52 = vpop.permute.xlu0 %1368 }
 0xf33   :  { %v3053_v53 = vadd.f32 %v1369_v52, %v1361_v51 }
 0xf34   :  { %v2381_v54 = vpop.eup %2380 }
 0xf35   :  { %2382 = vtanh.f32 %v3053_v53  ;;  %1267 = vrot.lane.b32.xlu1 %v2381_v54, %s2511_s5 }
 0xf42   :  { %v2383_v55 = vpop.eup %2382 }
 0xf43   :  { %1374 = vrot.lane.b32.xlu0 %v2383_v55, %s2511_s5 }
 0xfa7   :  { %v1268_v56 = vpop.permute.xlu1 %1267 }
 0xfa8   :  { %v1270_v57 = vmul.f32 %v2377_v42, %v1268_v56 }
 0xfaa   :  { %v1379_v58 = vrot.slane %v1270_v57, 4  ;;  %1485 = vrot.lane.b32.xlu0 %v1270_v57, %s2512_s24  ;;  %v1729_v57 = vld [vmem:[%s3268_s10 + $0x78] sm:$0xff] }
 0xfac   :  { %1380 = vrot.lane.b32.xlu1 %v1379_v58, %s2512_s24  ;;  %v1728_v58 = vld [vmem:[%s3268_s10 + $0x70] sm:$0xff] }
 0xfb5   :  { %v1375_v59 = vpop.permute.xlu0 %1374 }
 0xfb6   :  { %v3060_v60 = vmul.f32 %v2379_v44, %v1375_v59  ;;  %v1726_v59 = vld [vmem:[%s3268_s10 + $0x60] sm:$0xff] }
 0xfb8   :  { %v1489_v61 = vrot.slane %v3060_v60, 4 }
 0xfba   :  { %1490 = vrot.lane.b32.xlu1 %v1489_v61, %s2513_s8  ;;  %v1725_v61 = vld [vmem:[%s3268_s10 + $0x58] sm:$0xff] }
0x101e   :  { %v1381_v62 = vpop.permute.xlu1 %1380 }
0x101f   :  { %2211 = vmatmul.mubr.msk.f32.vlgmr.msra.gmra.mxu1 %vm367_vm13, %v1381_v62 }
0x1020   :  { %2214 = vmatpush3.msra.mxu1 %v2902_v24  ;;  %2229 = vmatprep.mubr.msk.f32.mxu1 %vm2503_vm5, %v2502_v48  ;;  %v1486_v24 = vpop.permute.xlu0 %1485 }
0x1021   :  { %2215 = vmatprep.subr.mxu1 %v2502_v48 }
0x1022   :  { %2216 = vmatpush3.msra.mxu1 %v2907_v26 }
0x1023   :  { %2217 = vmatprep.subr.mxu1 %v2502_v48 }
0x1024   :  { %2218 = vmatpush3.msra.mxu1 %v2914_v28 }
0x1025   :  { %2219 = vmatprep.subr.mxu1 %v2502_v48 }
0x1026   :  { %2220 = vmatpush3.msra.mxu1 %v2921_v30 }
0x1027   :  { %2221 = vmatprep.subr.mxu1 %v2502_v48 }
0x1028   :  { %2222 = vmatpush3.msra.mxu1 %v2928_v31 }
0x1029   :  { %2223 = vmatprep.subr.mxu1 %v2502_v48 }
0x102a   :  { %2224 = vmatpush3.msra.mxu1 %v2935_v32 }
0x102b   :  { %2225 = vmatprep.subr.mxu1 %v2502_v48 }
0x102c   :  { %v1491_v26 = vpop.permute.xlu1 %1490  ;;  %2226 = vmatpush3.msra.mxu1 %v2942_v34 }
0x102d   :  { %v1493_v28 = vsel %vm367_vm13, %v1486_v24, %v1491_v26  ;;  %2227 = vmatprep.subr.mxu1 %v2502_v48  ;;  %v1724_v24 = vld [vmem:[%s3268_s10 + $0x50] sm:$0xff]  ;;  %v1723_v26 = vld [vmem:[%s3268_s10 + $0x48] sm:$0xff] }
0x102e   :  { %v1495_v63 = vrot.slane %v1493_v28, 4  ;;  %2228 = vmatpush3.msra.mxu1 %v2952_v35  ;;  %v1722_v28 = vld [vmem:[%s3268_s10 + $0x40] sm:$0xff] }
0x102f   :  { %2251 = vmatprep.subr.mxu1 %v2502_v48 }
0x1030   :  { %2230 = vmatmul.mubr.msk.f32.vlgmr.msra.gmra.mxu1 %vm1066_vm0, %v1495_v63  ;;  %v1721_v63 = vld [vmem:[%s3268_s10 + $0x38] sm:$0xff] }
0x1031   :  { %2283 = vmatprep.mubr.msk.f32.mxu1 %vm2503_vm5, %v2502_v48  ;;  %2252 = vmatpush3.msra.mxu1 %v1729_v57 }
0x1032   :  { %2253 = vmatprep.subr.mxu1 %v2502_v48 }
0x1033   :  { %2254 = vmatpush3.msra.mxu1 %v1728_v58 }
0x1034   :  { %2255 = vmatprep.subr.mxu1 %v2502_v48 }
0x10df   :  { %v1450_v30 = vpop.f32.mrf.mxu1 }
0x10e0   :  { %v1455_v31 = vrot.slane %v1450_v30, 2  ;;  %v1720_v30 = vld [vmem:[%s3268_s10 + $0x30] sm:$0xff] }
0x10e1   :  { %v2212_v32 = vpop.f32.mrf.mxu1 }
0x10e2   :  { %v1457_v0 = vadd.f32 %v1455_v31, %v2891_v10  ;;  %v1718_v31 = vld [vmem:[%s3268_s10 + $0x20] sm:$0xff]  ;;  %v1717_v32 = vld [vmem:[%s3268_s10 + $0x18] sm:$0xff] }
0x10e4   :  { %2384 = vtanh.f32 %v1457_v0  ;;  %v1952_v4 = vmul.f32 -1.442695, %v1457_v0  ;;  %v1716_v0 = vld [vmem:[%s3268_s10 + $0x10] sm:$0xff] }
0x10f0   :  { %v1564_v34 = vpop.f32.mrf.mxu1 }
0x10f1   :  { %v2385_v1 = vpop.eup %2384  ;;  %v1565_v2 = vadd.f32 %v2980_v23, %v1564_v34  ;;  %v1715_v34 = vld [vmem:[%s3268_s10 + $0x8] sm:$0xff] }
0x10f2   :  { %v2231_v3 = vpop.f32.mrf.mxu1  ;;  %1470 = vrot.lane.b32.xlu1 %v2385_v1, %s2511_s5  ;;  %v1714_v1 = vld [vmem:[%s3268_s10] sm:$0xff] }
0x10f3   :  { %2386 = vtanh.f32 %v1565_v2  ;;  %v1954_v5 = vmul.f32 -1.442695, %v1565_v2  ;;  %v1823_v2 = vld [vmem:[%s3270_s12 + $0x78] sm:$0xff]  ;;  %v1822_v3 = vld [vmem:[%s3270_s12 + $0x70] sm:$0xff] }
0x10f4   :  { %2388 = vpow2.f32 %v1952_v4  ;;  %v1820_v4 = vld [vmem:[%s3270_s12 + $0x60] sm:$0xff] }
0x10f5   :  { %2390 = vpow2.f32 %v1954_v5  ;;  %v1819_v5 = vld [vmem:[%s3270_s12 + $0x58] sm:$0xff] }
0x1100   :  { %v2387_v35 = vpop.eup %2386 }
0x1101   :  { %1577 = vrot.lane.b32.xlu0 %v2387_v35, %s2511_s5  ;;  %v2389_v6 = vpop.eup %2388  ;;  %v1821_v35 = vld [vmem:[%s3270_s12 + $0x68] sm:$0xff] }
0x1102   :  { %v1461_v8 = vadd.f32 1.0, %v2389_v6  ;;  %v2391_v10 = vpop.eup %2390  ;;  %v1818_v6 = vld [vmem:[%s3270_s12 + $0x50] sm:$0xff] }
0x1103   :  { %v1571_v9 = vadd.f32 1.0, %v2391_v10 }
0x1104   :  { %2392 = vrcp.f32 %v1461_v8 }
0x1105   :  { %2394 = vrcp.f32 %v1571_v9  ;;  %v1817_v9 = vld [vmem:[%s3270_s12 + $0x48] sm:$0xff] }
0x1111   :  { %v2393_v11 = vpop.eup %2392 }
0x1112   :  { %v2395_v14 = vpop.eup %2394  ;;  %v1468_v18 = vmul.f32 %v2393_v11, %v1466_v17 }
0x1113   :  { %v1575_v21 = vmul.f32 %v2395_v14, %v3053_v53 }
0x1164   :  { %v1471_v12 = vpop.permute.xlu1 %1470 }
0x1165   :  { %v1473_v13 = vmul.f32 %v2393_v11, %v1471_v12  ;;  %v1815_v12 = vld [vmem:[%s3270_s12 + $0x38] sm:$0xff] }
0x1167   :  { %1475 = vrot.lane.b32.xlu1 %v1473_v13, %s2511_s5  ;;  %v1814_v13 = vld [vmem:[%s3270_s12 + $0x30] sm:$0xff] }
0x1173   :  { %v1578_v15 = vpop.permute.xlu0 %1577 }
0x1174   :  { %v1580_v16 = vmul.f32 %v2395_v14, %v1578_v15  ;;  %v1812_v15 = vld [vmem:[%s3270_s12 + $0x20] sm:$0xff] }
0x1176   :  { %1582 = vrot.lane.b32.xlu0 %v1580_v16, %s2511_s5  ;;  %v1811_v16 = vld [vmem:[%s3270_s12 + $0x18] sm:$0xff] }
0x11d9   :  { %v1476_v19 = vpop.permute.xlu1 %1475 }
0x11da   :  { %v1478_v20 = vadd.f32 %v1476_v19, %v1468_v18 }
0x11dc   :  { %2396 = vtanh.f32 %v1478_v20 }
0x11e8   :  { %v1583_v22 = vpop.permute.xlu0 %1582 }
0x11e9   :  { %v2397_v33 = vpop.eup %2396  ;;  %v1585_v36 = vadd.f32 %v1583_v22, %v1575_v21 }
0x11ea   :  { %1481 = vrot.lane.b32.xlu1 %v2397_v33, %s2511_s5  ;;  %v1810_v33 = vld [vmem:[%s3270_s12 + $0x10] sm:$0xff] }
0x11eb   :  { %2398 = vtanh.f32 %v1585_v36 }
0x11f8   :  { %v2399_v37 = vpop.eup %2398 }
0x11f9   :  { %1588 = vrot.lane.b32.xlu0 %v2399_v37, %s2511_s5  ;;  %v1808_v37 = vld [vmem:[%s3270_s12] sm:$0xff] }
0x125c   :  { %v1482_v38 = vpop.permute.xlu1 %1481 }
0x125d   :  { %v1484_v39 = vmul.f32 %v2393_v11, %v1482_v38  ;;  %v1816_v11 = vld [vmem:[%s3270_s12 + $0x40] sm:$0xff] }
0x125e   :  { %v1957_v38 = vld [vmem:[%s3269_s11] ss:$0 sm:$0xff] }
0x125f   :  { %1593 = vrot.lane.b32.xlu0 %v1484_v39, %s2512_s24 }
0x126b   :  { %v1589_v25 = vpop.permute.xlu0 %1588 }
0x126c   :  { %v3098_v40 = vmul.f32 %v2395_v14, %v1589_v25  ;;  %v1813_v14 = vld [vmem:[%s3270_s12 + $0x28] sm:$0xff] }
0x126e   :  { %v1597_v41 = vrot.slane %v3098_v40, 2 }
0x1270   :  { %1598 = vrot.lane.b32.xlu1 %v1597_v41, %s2513_s8 }
0x12d1   :  { %v1594_v42 = vpop.permute.xlu0 %1593 }
0x12e2   :  { %v1599_v43 = vpop.permute.xlu1 %1598 }
0x12e3   :  { %v1601_v27 = vsel %vm367_vm13, %v1594_v42, %v1599_v43  ;;  %v1958_v42 = vld [vmem:[%s3271_s13] ss:$0 sm:$0xff] }
0x12e4   :  { %v1603_v44 = vrot.slane %v1601_v27, 6 }
0x12e6   :  { %2249 = vmatmul.mubr.msk.f32.vlgmr.msra.gmra.mxu0 %vm1066_vm0, %v1603_v44 }
0x12e7   :  { %2318 = vmatprep.mubr.msk.f32.mxu0 %vm2503_vm5, %v2502_v48  ;;  %2287 = vmatpush3.msra.mxu0 %v1823_v2 }
0x12e8   :  { %2288 = vmatprep.subr.mxu0 %v2502_v48 }
0x12e9   :  { %2289 = vmatpush3.msra.mxu0 %v1822_v3 }
0x12ea   :  { %2290 = vmatprep.subr.mxu0 %v2502_v48 }
0x12eb   :  { %2291 = vmatpush3.msra.mxu0 %v1821_v35 }
0x12ec   :  { %2292 = vmatprep.subr.mxu0 %v2502_v48 }
0x12ed   :  { %2293 = vmatpush3.msra.mxu0 %v1820_v4 }
0x12ee   :  { %2294 = vmatprep.subr.mxu0 %v2502_v48 }
0x12ef   :  { %2295 = vmatpush3.msra.mxu0 %v1819_v5 }
0x12f0   :  { %2296 = vmatprep.subr.mxu0 %v2502_v48 }
0x12f1   :  { %2297 = vmatpush3.msra.mxu0 %v1818_v6 }
0x12f2   :  { %2298 = vmatprep.subr.mxu0 %v2502_v48 }
0x12f3   :  { %2299 = vmatpush3.msra.mxu0 %v1817_v9 }
0x12f4   :  { %2300 = vmatprep.subr.mxu0 %v2502_v48 }
0x12f5   :  { %2301 = vmatpush3.msra.mxu0 %v1816_v11 }
0x12f6   :  { %2302 = vmatprep.subr.mxu0 %v2502_v48 }
0x12f7   :  { %2303 = vmatpush3.msra.mxu0 %v1815_v12 }
0x12f8   :  { %2304 = vmatprep.subr.mxu0 %v2502_v48 }
0x12f9   :  { %2305 = vmatpush3.msra.mxu0 %v1814_v13 }
0x12fa   :  { %2306 = vmatprep.subr.mxu0 %v2502_v48 }
0x12fb   :  { %2307 = vmatpush3.msra.mxu0 %v1813_v14 }
0x12fc   :  { %2308 = vmatprep.subr.mxu0 %v2502_v48 }
0x12fd   :  { %2309 = vmatpush3.msra.mxu0 %v1812_v15 }
0x12fe   :  { %2310 = vmatprep.subr.mxu0 %v2502_v48 }
0x12ff   :  { %2311 = vmatpush3.msra.mxu0 %v1811_v16 }
0x1300   :  { %2312 = vmatprep.subr.mxu0 %v2502_v48 }
0x1301   :  { %2313 = vmatpush3.msra.mxu0 %v1810_v33 }
0x1302   :  { %2314 = vmatprep.subr.mxu0 %v2502_v48 }
0x13a6   :  { %v1672_v45 = vpop.f32.mrf.mxu0 }
0x13a7   :  { %v1673_v29 = vadd.f32 %v2980_v23, %v1672_v45 }
0x13a8   :  { %v2250_v46 = vpop.f32.mrf.mxu0 }
0x13a9   :  { %2400 = vtanh.f32 %v1673_v29  ;;  %v1956_v49 = vmul.f32 -1.442695, %v1673_v29 }
0x13ab   :  { %2402 = vpow2.f32 %v1956_v49 }
0x13b6   :  { %v2401_v47 = vpop.eup %2400 }
0x13b7   :  { %1685 = vrot.lane.b32.xlu0 %v2401_v47, %s2511_s5 }
0x13b8   :  { %v2403_v50 = vpop.eup %2402 }
0x13b9   :  { %v1679_v51 = vadd.f32 1.0, %v2403_v50 }
0x13bb   :  { %2404 = vrcp.f32 %v1679_v51 }
0x13c8   :  { %v3108_v52 = vpop.eup %2404 }
0x13c9   :  { %v1683_v23 = vmul.f32 %v3108_v52, %v1585_v36  ;;  %v1809_v36 = vld [vmem:[%s3270_s12 + $0x8] sm:$0xff]  ;;  %s2468_s12 = scalar_lea.vmem %s1910_s3, 32 }
0x13ca   :  { %2315 = vmatpush3.msra.mxu0 %v1809_v36  ;;  %p2469_p1 = scmp.ne.s32.totalorder %s1910_s3, %s2468_s12  ;;  %p2474_p3 = scmp.lt.s32.totalorder %s2468_s12, %s2468_s12 }
0x13cb   :  { %2316 = vmatprep.subr.mxu0 %v2502_v48 }
0x13cc   :  { %2317 = vmatpush3.msra.mxu0 %v1808_v37  ;;  %p2475_p4 = por %p2474_p3, %p2473_p2 }
0x13ce   :  { %p2476_p5 = pnand %p2475_p4, %p2469_p1 }
0x1429   :  { %v1686_v53 = vpop.permute.xlu0 %1685 }
0x142a   :  { %v1688_v54 = vmul.f32 %v3108_v52, %v1686_v53 }
0x142c   :  { %1690 = vrot.lane.b32.xlu1 %v1688_v54, %s2511_s5 }
0x1430   :  { %1700 = vrot.lane.b32.xlu1 %v2997_v7, %s2512_s24  ;;  %v1727_v7 = vld [vmem:[%s3268_s10 + $0x68] sm:$0xff] }
0x1431   :  { %2256 = vmatpush3.msra.mxu1 %v1727_v7 }
0x1432   :  { %2257 = vmatprep.subr.mxu1 %v2502_v48 }
0x1433   :  { %2258 = vmatpush3.msra.mxu1 %v1726_v59 }
0x1434   :  { %2259 = vmatprep.subr.mxu1 %v2502_v48 }
0x1435   :  { %2260 = vmatpush3.msra.mxu1 %v1725_v61 }
0x1436   :  { %2261 = vmatprep.subr.mxu1 %v2502_v48 }
0x1437   :  { %2262 = vmatpush3.msra.mxu1 %v1724_v24 }
0x1438   :  { %2263 = vmatprep.subr.mxu1 %v2502_v48 }
0x1439   :  { %2264 = vmatpush3.msra.mxu1 %v1723_v26 }
0x143a   :  { %2265 = vmatprep.subr.mxu1 %v2502_v48 }
0x143b   :  { %2266 = vmatpush3.msra.mxu1 %v1722_v28 }
0x143c   :  { %2267 = vmatprep.subr.mxu1 %v2502_v48 }
0x143d   :  { %2268 = vmatpush3.msra.mxu1 %v1721_v63 }
0x143e   :  { %2269 = vmatprep.subr.mxu1 %v2502_v48 }
0x143f   :  { %2270 = vmatpush3.msra.mxu1 %v1720_v30 }
0x1440   :  { %2271 = vmatprep.subr.mxu1 %v2502_v48 }
0x149e   :  { %v1691_v55 = vpop.permute.xlu1 %1690 }
0x149f   :  { %v1693_v56 = vadd.f32 %v1691_v55, %v1683_v23 }
0x14a1   :  { %2406 = vtanh.f32 %v1693_v56 }
0x14a2   :  { %v1701_v18 = vpop.permute.xlu1 %1700 }
0x14ae   :  { %v2407_v62 = vpop.eup %2406 }
0x14af   :  { %1696 = vrot.lane.b32.xlu0 %v2407_v62, %s2511_s5 }
0x14b3   :  { %1703 = vrot.lane.b32.xlu0 %v3060_v60, %s2513_s8  ;;  %v1719_v60 = vld [vmem:[%s3268_s10 + $0x28] sm:$0xff] }
0x14b4   :  { %2272 = vmatpush3.msra.mxu1 %v1719_v60 }
0x14b5   :  { %2273 = vmatprep.subr.mxu1 %v2502_v48 }
0x14b6   :  { %2274 = vmatpush3.msra.mxu1 %v1718_v31 }
0x14b7   :  { %2275 = vmatprep.subr.mxu1 %v2502_v48 }
0x14b8   :  { %2276 = vmatpush3.msra.mxu1 %v1717_v32 }
0x14b9   :  { %2277 = vmatprep.subr.mxu1 %v2502_v48 }
0x14ba   :  { %2278 = vmatpush3.msra.mxu1 %v1716_v0 }
0x14bb   :  { %2279 = vmatprep.subr.mxu1 %v2502_v48 }
0x14bc   :  { %2280 = vmatpush3.msra.mxu1 %v1715_v34 }
0x14bd   :  { %2281 = vmatprep.subr.mxu1 %v2502_v48 }
0x14be   :  { %2282 = vmatpush3.msra.mxu1 %v1714_v1 }
0x1521   :  { %v1697_v8 = vpop.permute.xlu0 %1696 }
0x1522   :  { %v1699_v10 = vmul.f32 %v3108_v52, %v1697_v8 }
0x1524   :  { %1707 = vrot.lane.b32.xlu1 %v1699_v10, %s2511_s5 }
0x1525   :  { %v1704_v17 = vpop.permute.xlu0 %1703 }
0x1526   :  { %v1710_v19 = vsel %vm367_vm13, %v1701_v18, %v1704_v17 }
0x1527   :  { %v1711_v21 = vsel %vm1066_vm0, %v1710_v19, %v3098_v40 }
0x1596   :  { %v1708_v20 = vpop.permute.xlu1 %1707 }
0x1597   :  { %v1713_v22 = vsel %vm1712_vm3, %v1711_v21, %v1708_v20 }
0x1598   :  { %2284 = vmatmul.mubr.f32.vlgmr.msra.gmra.mxu1 %v1713_v22 }
0x1658   :  { %v1803_v39 = vpop.f32.mrf.mxu1 }
0x1659   :  { %v1804_v25 = vadd.f32 %v1957_v38, %v1803_v39 }
0x165a   :  { %v2285_v40 = vpop.f32.mrf.mxu1 }
0x165b   :  { %v1807_v41 = vmax.f32 %v1804_v25, 0.0 }
0x165d   :  { %2319 = vmatmul.mubr.f32.vlgmr.msra.gmra.mxu0 %v1807_v41 }
0x171d   :  { %v1897_v48 = vpop.f32.mrf.mxu0 }
0x171e   :  { %v1898_v43 = vadd.f32 %v1958_v42, %v1897_v48 }
0x171f   :  { %v2320_v27 = vpop.f32.mrf.mxu0 }
0x1720   :  { %1902 = vst.msk [vmem:[#allocation8] sm:$0x3] %vm1901_vm4, %v1898_v43 }
0x1721   :  { %2479 = shalt.err (!%p2476_p5)
}
0x1722   :  { %1912 = dma.vmem_to_hbm [thread:$0]  %s1910_s3, 32, %s3272_s14, [#allocation4]  }
0x1723   :  { %2492 = dma.done.wait [#allocation4], 32  }
0x1724   :  { %2493 = vsyncadd [#allocation4], 4294967264 }
0x1725   :  { %1916 = vsyncpa [#allocation3], 1 }
0x1726   :  { %1917 = vsyncpa [#allocation6], 1 }
0x1727   :  { %1918 = vsyncpa [#allocation4], 1 }

</bundles_post_ra>
